<compile_context>
chip_gen: v5e
topology: v5e:2x2
jax: 0.10.0
libtpu: 0.0.40
codegen_flags: <defaults>
</compile_context>

<pallas_src>
import functools
import math

import jax
import jax.numpy as jnp
import numpy as np
from jax.experimental import pallas as pl
from jax.experimental.pallas import tpu as pltpu


# ----------------------------------------------------------------------------------
# In-kernel math helpers (only ops with guaranteed Mosaic lowerings)
# ----------------------------------------------------------------------------------
def _erf(x):
    # Abramowitz & Stegun 7.1.26 rational approximation (max abs err ~1.5e-7);
    # the divide is replaced by an EUP approximate reciprocal (free slot).
    p = 0.3275911
    a1, a2, a3, a4, a5 = 0.254829592, -0.284496736, 1.421413741, -1.453152027, 1.061405429
    ax = jnp.abs(x)
    t = pl.reciprocal(1.0 + p * ax, approx=True)
    poly = ((((a5 * t + a4) * t + a3) * t + a2) * t + a1) * t
    y = 1.0 - poly * jnp.exp(-ax * ax)
    return jnp.where(x >= 0.0, y, -y)


def _gelu_exact(x):
    return 0.5 * x * (1.0 + _erf(x * (1.0 / math.sqrt(2.0))))


# ----------------------------------------------------------------------------------
# Kernel body: one grid step == one scale.
#   x_scaled = GELU(LayerNorm(x @ Wt + bt))
#   gates    = x_scaled @ Wgx + h_prev @ Wgh + b_g        (two accumulated MXU dots)
#   act      = sigmoid(gates); g block = 2*sigmoid(2z)-1 == tanh(z)   (2x pre-folded)
#   c_new    = f*c_prev + i*g ; h = o*tanh(c_new) ; c_out = dec*c_prev + (1-dec)*c_new
#   v_acc   += h @ w_v[s] ;  mix_acc += h @ w_mix[s]
# Last step: out = mix_acc + b_mix + (v_acc + b_v) @ w_o + b_o
# (nn.MultiheadAttention with a length-1 key/value sequence has softmax weight == 1, so
#  q/k projections and ssm_state are inert; attention == out_proj(v_proj(multi_scale)).)
# ----------------------------------------------------------------------------------
def _xlstm_scale_kernel(x_ref, hprev_ref, cprev_ref,
                        wt_ref, bt_ref, lnw_ref, lnb_ref,
                        wgx_ref, wgh_ref, bg_ref, decays_ref,
                        wv_ref, bv_ref, wo_ref, bo_ref, wmix_ref, bmix_ref,
                        out_ref, h_out_ref, c_out_ref,
                        vacc_ref, mixacc_ref, *, D):
    s = pl.program_id(0)

    @pl.when(s == 0)
    def _():
        vacc_ref[...] = jnp.zeros_like(vacc_ref)
        mixacc_ref[...] = jnp.zeros_like(mixacc_ref)

    x_bf = x_ref[...].astype(jnp.bfloat16)
    h_prev = hprev_ref[0]                                    # (B, D) f32
    c_prev = cprev_ref[0]                                    # (B, D) f32

    # scale_transform: Linear -> LayerNorm(eps=1e-5) -> exact GELU
    y = jnp.dot(x_bf, wt_ref[0], preferred_element_type=jnp.float32) + bt_ref[0]
    mu = jnp.mean(y, axis=-1, keepdims=True)
    d = y - mu
    var = jnp.mean(d * d, axis=-1, keepdims=True)
    y = d * jax.lax.rsqrt(var + 1e-5) * lnw_ref[0] + lnb_ref[0]
    x_s = _gelu_exact(y)

    # LSTMCell gates: two accumulated MXU dots (no lane-axis concat of [x_s, h_prev]).
    gates = (jnp.dot(x_s.astype(jnp.bfloat16), wgx_ref[0],
                     preferred_element_type=jnp.float32)
             + jnp.dot(h_prev.astype(jnp.bfloat16), wgh_ref[0],
                       preferred_element_type=jnp.float32)
             + bg_ref[0])

    # One slab-wide sigmoid; the g block carries a pre-folded 2x so tanh(z)=2*sigmoid(2z)-1.
    sg = jax.nn.sigmoid(gates)
    lane = jax.lax.broadcasted_iota(jnp.int32, gates.shape, 1)
    act = jnp.where((lane >= 2 * D) & (lane < 3 * D), 2.0 * sg - 1.0, sg)
    i_g = act[:, 0 * D:1 * D]
    f_g = act[:, 1 * D:2 * D]
    g_g = act[:, 2 * D:3 * D]
    o_g = act[:, 3 * D:4 * D]

    c_new = f_g * c_prev + i_g * g_g
    h_new = o_g * jnp.tanh(c_new)

    dec = decays_ref[s]                                      # scalar from SMEM
    c_out_ref[0] = dec * c_prev + (1.0 - dec) * c_new
    h_out_ref[0] = h_new

    # Fusion/mix epilogue: per-scale partial accumulation (no concat, no (B,S*D) matmul).
    h_bf = h_new.astype(jnp.bfloat16)
    vacc_ref[...] += jnp.dot(h_bf, wv_ref[0], preferred_element_type=jnp.float32)
    mixacc_ref[...] += jnp.dot(h_bf, wmix_ref[0], preferred_element_type=jnp.float32)

    @pl.when(s == pl.num_programs(0) - 1)
    def _():
        v = (vacc_ref[...] + bv_ref[...]).astype(jnp.bfloat16)
        fused = jnp.dot(v, wo_ref[...], preferred_element_type=jnp.float32) + bo_ref[...]
        out_ref[...] = mixacc_ref[...] + bmix_ref[...] + fused


# ----------------------------------------------------------------------------------
# Wrapper: one pallas_call, grid over scales, per-scale weight streaming.
# ----------------------------------------------------------------------------------
def enhanced_xlstm_forward(params, x, prev_states, ssm_state):
    B, D = x.shape
    S = params["w_t"].shape[0]

    if not prev_states:
        h_prev = jnp.broadcast_to(x, (S, B, D)).astype(jnp.float32)
        c_prev = jnp.zeros((S, B, D), jnp.float32)
    else:
        h_prev = jnp.stack([h for h, _ in prev_states]).astype(jnp.float32)
        c_prev = jnp.stack([c for _, c in prev_states]).astype(jnp.float32)

    # With a length-1 key/value sequence the attention softmax weight is exactly 1, so
    # ssm_state and the q/k projections cannot affect the output.
    # TODO(synk): fusion dropout(p=0.1) is a train-time op; this is the eval-mode forward.
    del ssm_state

    def const(shape):
        return pl.BlockSpec(shape, lambda s: tuple(0 for _ in shape))

    def per_scale(shape):
        return pl.BlockSpec((1,) + shape, lambda s: (s,) + tuple(0 for _ in shape))

    smem = pl.BlockSpec(memory_space=pltpu.MemorySpace.SMEM)

    out, h_all, c_all = pl.pallas_call(
        functools.partial(_xlstm_scale_kernel, D=D),
        out_shape=(
            jax.ShapeDtypeStruct((B, D), jnp.float32),
            jax.ShapeDtypeStruct((S, B, D), jnp.float32),
            jax.ShapeDtypeStruct((S, B, D), jnp.float32),
        ),
        grid=(S,),
        in_specs=[
            const((B, D)),            # x (same block every step)
            per_scale((B, D)),        # h_prev
            per_scale((B, D)),        # c_prev
            per_scale((D, D)),        # w_t
            per_scale((1, D)),        # b_t
            per_scale((1, D)),        # ln_w
            per_scale((1, D)),        # ln_b
            per_scale((D, 4 * D)),    # w_gx
            per_scale((D, 4 * D)),    # w_gh
            per_scale((1, 4 * D)),    # b_g
            smem,                     # decays (scalars)
            per_scale((D, D)),        # w_v   (per-scale slab of (S*D, D))
            const((1, D)),            # b_v
            const((D, D)),            # w_o
            const((1, D)),            # b_o
            per_scale((D, D)),        # w_mix (per-scale slab of (S*D, D))
            const((1, D)),            # b_mix
        ],
        out_specs=(
            const((B, D)),            # out (written only on the last scale)
            per_scale((B, D)),        # new h
            per_scale((B, D)),        # new c
        ),
        scratch_shapes=[
            pltpu.VMEM((B, D), jnp.float32),   # v_acc
            pltpu.VMEM((B, D), jnp.float32),   # mix_acc
        ],
        compiler_params=pltpu.CompilerParams(
            # the scale axis carries the epilogue accumulation -> "arbitrary"
            dimension_semantics=("arbitrary",),
            vmem_limit_bytes=32 * 1024 * 1024,
        ),
        # Reuse the freshly-stacked h/c buffers for the new states (no extra HBM alloc).
        input_output_aliases={1: 1, 2: 2},
    )(x, h_prev, c_prev,
      params["w_t"], params["b_t"], params["ln_w"], params["ln_b"],
      params["w_gx"], params["w_gh"], params["b_g"], params["decays"],
      params["w_v"], params["b_v"], params["w_o"], params["b_o"],
      params["w_mix"], params["b_mix"])

    new_states = [(h_all[i], c_all[i]) for i in range(S)]
    return out, new_states


# ----------------------------------------------------------------------------------
# Parameter init (PyTorch-like per-gate layout) + host-side packing for the kernel
# ----------------------------------------------------------------------------------
def init_params(key, d_model, scales):
    D = d_model
    ks = jax.random.split(key, 12)

    def lin(k, shape, fan_in):
        return jax.random.uniform(k, shape, jnp.float32, -1.0, 1.0) / math.sqrt(fan_in)

    # NOTE: the reference module's nn.MultiheadAttention (kdim defaults to d_model) would
    # reject keys of width scales*d_model; we use kdim=vdim=scales*d_model projections as
    # the forward intends. q/k projections are inert (length-1 key sequence).
    return {
        "w_t": lin(ks[0], (scales, D, D), D),
        "b_t": lin(ks[1], (scales, 1, D), D),
        "ln_w": jnp.ones((scales, 1, D), jnp.float32),
        "ln_b": jnp.zeros((scales, 1, D), jnp.float32),
        "w_ih": lin(ks[2], (scales, 4, D, D), D),
        "w_hh": lin(ks[3], (scales, 4, D, D), D),
        "b_ih": lin(ks[4], (scales, 4, 1, D), D),
        "b_hh": lin(ks[5], (scales, 4, 1, D), D),
        "decays": jnp.linspace(0.5, 0.9, scales).astype(jnp.float32),
        "w_v": lin(ks[6], (scales * D, D), scales * D),
        "b_v": lin(ks[7], (1, D), scales * D),
        "w_o": lin(ks[8], (D, D), D),
        "b_o": lin(ks[9], (1, D), D),
        "w_mix": lin(ks[10], (scales * D, D), scales * D),
        "b_mix": lin(ks[11], (1, D), scales * D),
    }


def pack_params(raw):
    """One-time host-side packing: split/fuse gate weights, fold 2x into the g-gate
    columns (tanh(z) = 2*sigmoid(2z) - 1), cast matmul weights to bf16."""
    S, _, D, _ = raw["w_ih"].shape
    # gate k occupies output columns [k*D, (k+1)*D)
    w_gx = jnp.concatenate([raw["w_ih"][:, k] for k in range(4)], axis=-1)    # (S, D, 4D)
    w_gh = jnp.concatenate([raw["w_hh"][:, k] for k in range(4)], axis=-1)    # (S, D, 4D)
    b_g = jnp.concatenate([raw["b_ih"][:, k] + raw["b_hh"][:, k]
                           for k in range(4)], axis=-1)                        # (S, 1, 4D)
    col = jnp.arange(4 * D)
    gscale = jnp.where((col >= 2 * D) & (col < 3 * D), 2.0, 1.0).astype(jnp.float32)
    w_gx = w_gx * gscale
    w_gh = w_gh * gscale
    b_g = b_g * gscale
    # TODO(synk): int8 (v5e/v6e) / fp8 (v7x) weight quantization for the big matrices is a
    # further HBM-bandwidth win; left out to keep the numerics bf16-exact here.
    return {
        "w_t": raw["w_t"].astype(jnp.bfloat16),
        "b_t": raw["b_t"],
        "ln_w": raw["ln_w"],
        "ln_b": raw["ln_b"],
        "w_gx": w_gx.astype(jnp.bfloat16),
        "w_gh": w_gh.astype(jnp.bfloat16),
        "b_g": b_g,
        "decays": raw["decays"],
        "w_v": raw["w_v"].reshape(S, D, D).astype(jnp.bfloat16),
        "b_v": raw["b_v"],
        "w_o": raw["w_o"].astype(jnp.bfloat16),
        "b_o": raw["b_o"],
        "w_mix": raw["w_mix"].reshape(S, D, D).astype(jnp.bfloat16),
        "b_mix": raw["b_mix"],
    }


# ----------------------------------------------------------------------------------
# Pure-JAX f32 reference on the RAW (PyTorch-layout) parameters.  Weight tensors are
# rounded through bf16 (same storage precision the kernel uses) so the comparison
# isolates kernel math, not the deliberate weight-precision choice.
# ----------------------------------------------------------------------------------
def reference_forward(raw, x, prev_states, ssm_state):
    def q(w):
        return w.astype(jnp.bfloat16).astype(jnp.float32)

    S = raw["w_t"].shape[0]
    D = x.shape[-1]
    outs, new_states = [], []
    for s in range(S):
        h_prev, c_prev = prev_states[s]
        y = x @ q(raw["w_t"][s]) + raw["b_t"][s, 0]
        mu = y.mean(-1, keepdims=True)
        var = ((y - mu) ** 2).mean(-1, keepdims=True)
        y = (y - mu) / jnp.sqrt(var + 1e-5) * raw["ln_w"][s, 0] + raw["ln_b"][s, 0]
        xs = 0.5 * y * (1.0 + jax.lax.erf(y / jnp.sqrt(2.0)))
        gs = [xs @ q(raw["w_ih"][s, k]) + raw["b_ih"][s, k, 0]
              + h_prev @ q(raw["w_hh"][s, k]) + raw["b_hh"][s, k, 0] for k in range(4)]
        i_g = jax.nn.sigmoid(gs[0])
        f_g = jax.nn.sigmoid(gs[1])
        g_g = jnp.tanh(gs[2])
        o_g = jax.nn.sigmoid(gs[3])
        c_new = f_g * c_prev + i_g * g_g
        h_new = o_g * jnp.tanh(c_new)
        dec = raw["decays"][s]
        c_out = dec * c_prev + (1.0 - dec) * c_new
        outs.append(h_new)
        new_states.append((h_new, c_out))
    ms = jnp.concatenate(outs, axis=-1)
    v = ms @ q(raw["w_v"]) + raw["b_v"][0]
    fused = v @ q(raw["w_o"]) + raw["b_o"][0]
    out = ms @ q(raw["w_mix"]) + raw["b_mix"][0] + fused
    return out, new_states


if __name__ == "__main__":
    B, D, S = 2, 32, 3   # small test: batch=2, d_model=32, scales=3

    keys = jax.random.split(jax.random.PRNGKey(0), 12)
    x = jax.random.normal(keys[0], (B, D), jnp.float32)
    ssm_state = jax.random.normal(keys[1], (B, D), jnp.float32)
    prev_states = [
        (jax.random.normal(keys[2 + 2 * i], (B, D), jnp.float32),
         jax.random.normal(keys[3 + 2 * i], (B, D), jnp.float32))
        for i in range(S)
    ]
    raw = init_params(keys[10], D, S)
    params = pack_params(raw)

    fwd = jax.jit(enhanced_xlstm_forward)
    out, new_states = fwd(params, x, prev_states, ssm_state)
    out = jax.block_until_ready(out)
    new_states = jax.block_until_ready(new_states)

    ref_out, ref_states = reference_forward(raw, x, prev_states, ssm_state)
    np.testing.assert_allclose(np.asarray(out), np.asarray(ref_out), rtol=2e-2, atol=2e-2)
    for (h, c), (rh, rc) in zip(new_states, ref_states):
        np.testing.assert_allclose(np.asarray(h), np.asarray(rh), rtol=2e-2, atol=2e-2)
        np.testing.assert_allclose(np.asarray(c), np.asarray(rc), rtol=2e-2, atol=2e-2)

    print("KERNEL_OK")
</pallas_src>

<mosaic_0001>
module attributes {stable_mosaic.version = 11 : i64} {
  func.func @_xlstm_scale_kernel(%arg0: i32, %arg1: memref<2x32xf32, #tpu.memory_space<vmem>>, %arg2: memref<1x2x32xf32, #tpu.memory_space<vmem>>, %arg3: memref<1x2x32xf32, #tpu.memory_space<vmem>>, %arg4: memref<1x32x32xbf16, #tpu.memory_space<vmem>>, %arg5: memref<1x1x32xf32, #tpu.memory_space<vmem>>, %arg6: memref<1x1x32xf32, #tpu.memory_space<vmem>>, %arg7: memref<1x1x32xf32, #tpu.memory_space<vmem>>, %arg8: memref<1x32x128xbf16, #tpu.memory_space<vmem>>, %arg9: memref<1x32x128xbf16, #tpu.memory_space<vmem>>, %arg10: memref<1x1x128xf32, #tpu.memory_space<vmem>>, %arg11: memref<3xf32, #tpu.memory_space<smem>>, %arg12: memref<1x32x32xbf16, #tpu.memory_space<vmem>>, %arg13: memref<1x32xf32, #tpu.memory_space<vmem>>, %arg14: memref<32x32xbf16, #tpu.memory_space<vmem>>, %arg15: memref<1x32xf32, #tpu.memory_space<vmem>>, %arg16: memref<1x32x32xbf16, #tpu.memory_space<vmem>>, %arg17: memref<1x32xf32, #tpu.memory_space<vmem>>, %arg18: memref<2x32xf32, #tpu.memory_space<vmem>>, %arg19: memref<1x2x32xf32, #tpu.memory_space<vmem>>, %arg20: memref<1x2x32xf32, #tpu.memory_space<vmem>>, %arg21: memref<2x32xf32, #tpu.memory_space<vmem>>, %arg22: memref<2x32xf32, #tpu.memory_space<vmem>>) attributes {dimension_semantics = [#tpu.dimension_semantics<arbitrary>], iteration_bounds = array<i64: 3>, scalar_prefetch = 0 : i64, scratch_operands = 2 : i64, tpu.core_type = #tpu.core_type<tc>, window_params = [{pipeline_mode = #tpu.pipeline_mode<synchronous>, transform_indices = @transform_0, window_bounds = array<i64: 2, 32>}, {transform_indices = @transform_1, window_bounds = array<i64: 1, 2, 32>}, {transform_indices = @transform_2, window_bounds = array<i64: 1, 2, 32>}, {transform_indices = @transform_3, window_bounds = array<i64: 1, 32, 32>}, {transform_indices = @transform_4, window_bounds = array<i64: 1, 1, 32>}, {transform_indices = @transform_5, window_bounds = array<i64: 1, 1, 32>}, {transform_indices = @transform_6, window_bounds = array<i64: 1, 1, 32>}, {transform_indices = @transform_7, window_bounds = array<i64: 1, 32, 128>}, {transform_indices = @transform_8, window_bounds = array<i64: 1, 32, 128>}, {transform_indices = @transform_9, window_bounds = array<i64: 1, 1, 128>}, {transform_indices = @transform_10, window_bounds = array<i64: 3>}, {transform_indices = @transform_11, window_bounds = array<i64: 1, 32, 32>}, {pipeline_mode = #tpu.pipeline_mode<synchronous>, transform_indices = @transform_12, window_bounds = array<i64: 1, 32>}, {pipeline_mode = #tpu.pipeline_mode<synchronous>, transform_indices = @transform_13, window_bounds = array<i64: 32, 32>}, {pipeline_mode = #tpu.pipeline_mode<synchronous>, transform_indices = @transform_14, window_bounds = array<i64: 1, 32>}, {transform_indices = @transform_15, window_bounds = array<i64: 1, 32, 32>}, {pipeline_mode = #tpu.pipeline_mode<synchronous>, transform_indices = @transform_16, window_bounds = array<i64: 1, 32>}, {pipeline_mode = #tpu.pipeline_mode<synchronous>, transform_indices = @transform_17, window_bounds = array<i64: 2, 32>}, {transform_indices = @transform_18, window_bounds = array<i64: 1, 2, 32>}, {transform_indices = @transform_19, window_bounds = array<i64: 1, 2, 32>}]} {
    %c0_i32 = arith.constant 0 : i32
    %0 = arith.cmpi eq, %arg0, %c0_i32 : i32
    %1 = arith.extui %0 : i1 to i32
    %c0_i32_0 = arith.constant 0 : i32
    %2 = arith.cmpi ne, %1, %c0_i32_0 : i32
    scf.if %2 {
      %cst_77 = arith.constant 0.000000e+00 : f32
      %147 = vector.broadcast %cst_77 : f32 to vector<2x32xf32>
      %c0_78 = arith.constant 0 : index
      %c0_79 = arith.constant 0 : index
      %148 = vector.load %arg21[%c0_78, %c0_79] : memref<2x32xf32, #tpu.memory_space<vmem>>, vector<2x32xf32>
      tpu.vector_store %arg21[%c0_78, %c0_79], %147 {strides = array<i32>} : memref<2x32xf32, #tpu.memory_space<vmem>>, vector<2x32xf32>,
      %cst_80 = arith.constant 0.000000e+00 : f32
      %149 = vector.broadcast %cst_80 : f32 to vector<2x32xf32>
      %c0_81 = arith.constant 0 : index
      %c0_82 = arith.constant 0 : index
      %150 = vector.load %arg22[%c0_81, %c0_82] : memref<2x32xf32, #tpu.memory_space<vmem>>, vector<2x32xf32>
      tpu.vector_store %arg22[%c0_81, %c0_82], %149 {strides = array<i32>} : memref<2x32xf32, #tpu.memory_space<vmem>>, vector<2x32xf32>,
    } else {
    }
    %c0 = arith.constant 0 : index
    %c0_1 = arith.constant 0 : index
    %3 = vector.load %arg1[%c0, %c0_1] : memref<2x32xf32, #tpu.memory_space<vmem>>, vector<2x32xf32>
    %4 = arith.truncf %3 : vector<2x32xf32> to vector<2x32xbf16>
    %c0_2 = arith.constant 0 : index
    %c0_3 = arith.constant 0 : index
    %c0_4 = arith.constant 0 : index
    %5 = vector.load %arg2[%c0_2, %c0_3, %c0_4] : memref<1x2x32xf32, #tpu.memory_space<vmem>>, vector<1x2x32xf32>
    %6 = vector.shape_cast %5 : vector<1x2x32xf32> to vector<2x32xf32>
    %c0_5 = arith.constant 0 : index
    %c0_6 = arith.constant 0 : index
    %c0_7 = arith.constant 0 : index
    %7 = vector.load %arg3[%c0_5, %c0_6, %c0_7] : memref<1x2x32xf32, #tpu.memory_space<vmem>>, vector<1x2x32xf32>
    %8 = vector.shape_cast %7 : vector<1x2x32xf32> to vector<2x32xf32>
    %c0_8 = arith.constant 0 : index
    %c0_9 = arith.constant 0 : index
    %c0_10 = arith.constant 0 : index
    %9 = vector.load %arg4[%c0_8, %c0_9, %c0_10] : memref<1x32x32xbf16, #tpu.memory_space<vmem>>, vector<1x32x32xbf16>
    %10 = vector.shape_cast %9 : vector<1x32x32xbf16> to vector<32x32xbf16>
    %cst = arith.constant dense<0.000000e+00> : vector<2x32xf32>
    %11 = tpu.matmul %4, %10, %cst {dimension_numbers = #tpu.dot_dimension_numbers<[1], [0], [0], [1], [0, 0, 1, 1], [], []>} : vector<2x32xbf16>, vector<32x32xbf16>, vector<2x32xf32> -> vector<2x32xf32>
    %c0_11 = arith.constant 0 : index
    %c0_12 = arith.constant 0 : index
    %c0_13 = arith.constant 0 : index
    %12 = vector.load %arg5[%c0_11, %c0_12, %c0_13] : memref<1x1x32xf32, #tpu.memory_space<vmem>>, vector<1x1x32xf32>
    %13 = vector.shape_cast %12 : vector<1x1x32xf32> to vector<1x32xf32>
    %14 = vector.broadcast %13 : vector<1x32xf32> to vector<2x32xf32>
    %15 = arith.addf %11, %14 : vector<2x32xf32>
    %cst_14 = arith.constant dense<0.000000e+00> : vector<2xf32>
    %16 = vector.multi_reduction <add>, %15, %cst_14 [1] : vector<2x32xf32> to vector<2xf32>
    %17 = vector.shape_cast %16 : vector<2xf32> to vector<2x1xf32>
    %cst_15 = arith.constant 3.200000e+01 : f32
    %18 = vector.broadcast %cst_15 : f32 to vector<2x1xf32>
    %19 = arith.divf %17, %18 : vector<2x1xf32>
    %20 = vector.broadcast %19 : vector<2x1xf32> to vector<2x32xf32>
    %21 = arith.subf %15, %20 : vector<2x32xf32>
    %22 = arith.mulf %21, %21 : vector<2x32xf32>
    %cst_16 = arith.constant dense<0.000000e+00> : vector<2xf32>
    %23 = vector.multi_reduction <add>, %22, %cst_16 [1] : vector<2x32xf32> to vector<2xf32>
    %24 = vector.shape_cast %23 : vector<2xf32> to vector<2x1xf32>
    %cst_17 = arith.constant 3.200000e+01 : f32
    %25 = vector.broadcast %cst_17 : f32 to vector<2x1xf32>
    %26 = arith.divf %24, %25 : vector<2x1xf32>
    %cst_18 = arith.constant 9.99999974E-6 : f32
    %27 = vector.broadcast %cst_18 : f32 to vector<2x1xf32>
    %28 = arith.addf %26, %27 : vector<2x1xf32>
    %29 = math.rsqrt %28 : vector<2x1xf32>
    %30 = vector.broadcast %29 : vector<2x1xf32> to vector<2x32xf32>
    %31 = arith.mulf %21, %30 : vector<2x32xf32>
    %c0_19 = arith.constant 0 : index
    %c0_20 = arith.constant 0 : index
    %c0_21 = arith.constant 0 : index
    %32 = vector.load %arg6[%c0_19, %c0_20, %c0_21] : memref<1x1x32xf32, #tpu.memory_space<vmem>>, vector<1x1x32xf32>
    %33 = vector.shape_cast %32 : vector<1x1x32xf32> to vector<1x32xf32>
    %34 = vector.broadcast %33 : vector<1x32xf32> to vector<2x32xf32>
    %35 = arith.mulf %31, %34 : vector<2x32xf32>
    %c0_22 = arith.constant 0 : index
    %c0_23 = arith.constant 0 : index
    %c0_24 = arith.constant 0 : index
    %36 = vector.load %arg7[%c0_22, %c0_23, %c0_24] : memref<1x1x32xf32, #tpu.memory_space<vmem>>, vector<1x1x32xf32>
    %37 = vector.shape_cast %36 : vector<1x1x32xf32> to vector<1x32xf32>
    %38 = vector.broadcast %37 : vector<1x32xf32> to vector<2x32xf32>
    %39 = arith.addf %35, %38 : vector<2x32xf32>
    %cst_25 = arith.constant 5.000000e-01 : f32
    %40 = vector.broadcast %cst_25 : f32 to vector<2x32xf32>
    %41 = arith.mulf %40, %39 : vector<2x32xf32>
    %cst_26 = arith.constant 0.707106769 : f32
    %42 = vector.broadcast %cst_26 : f32 to vector<2x32xf32>
    %43 = arith.mulf %39, %42 : vector<2x32xf32>
    %44 = math.absf %43 : vector<2x32xf32>
    %cst_27 = arith.constant 0.327591091 : f32
    %45 = vector.broadcast %cst_27 : f32 to vector<2x32xf32>
    %46 = arith.mulf %45, %44 : vector<2x32xf32>
    %cst_28 = arith.constant 1.000000e+00 : f32
    %47 = vector.broadcast %cst_28 : f32 to vector<2x32xf32>
    %48 = arith.addf %47, %46 : vector<2x32xf32>
    %49 = tpu.reciprocal %48 {approx = true} : vector<2x32xf32> -> vector<2x32xf32>
    %cst_29 = arith.constant 1.06140542 : f32
    %50 = vector.broadcast %cst_29 : f32 to vector<2x32xf32>
    %51 = arith.mulf %50, %49 : vector<2x32xf32>
    %cst_30 = arith.constant -1.45315206 : f32
    %52 = vector.broadcast %cst_30 : f32 to vector<2x32xf32>
    %53 = arith.addf %51, %52 : vector<2x32xf32>
    %54 = arith.mulf %53, %49 : vector<2x32xf32>
    %cst_31 = arith.constant 1.42141378 : f32
    %55 = vector.broadcast %cst_31 : f32 to vector<2x32xf32>
    %56 = arith.addf %54, %55 : vector<2x32xf32>
    %57 = arith.mulf %56, %49 : vector<2x32xf32>
    %cst_32 = arith.constant -0.284496725 : f32
    %58 = vector.broadcast %cst_32 : f32 to vector<2x32xf32>
    %59 = arith.addf %57, %58 : vector<2x32xf32>
    %60 = arith.mulf %59, %49 : vector<2x32xf32>
    %cst_33 = arith.constant 0.254829586 : f32
    %61 = vector.broadcast %cst_33 : f32 to vector<2x32xf32>
    %62 = arith.addf %60, %61 : vector<2x32xf32>
    %63 = arith.mulf %62, %49 : vector<2x32xf32>
    %cst_34 = arith.constant 0.000000e+00 : f32
    %64 = vector.broadcast %cst_34 : f32 to vector<2x32xf32>
    %65 = arith.subf %64, %44 : vector<2x32xf32>
    %66 = arith.mulf %65, %44 : vector<2x32xf32>
    %67 = math.exp %66 : vector<2x32xf32>
    %68 = arith.mulf %63, %67 : vector<2x32xf32>
    %cst_35 = arith.constant 1.000000e+00 : f32
    %69 = vector.broadcast %cst_35 : f32 to vector<2x32xf32>
    %70 = arith.subf %69, %68 : vector<2x32xf32>
    %cst_36 = arith.constant 0.000000e+00 : f32
    %71 = vector.broadcast %cst_36 : f32 to vector<2x32xf32>
    %72 = arith.cmpf oge, %43, %71 : vector<2x32xf32>
    %cst_37 = arith.constant 0.000000e+00 : f32
    %73 = vector.broadcast %cst_37 : f32 to vector<2x32xf32>
    %74 = arith.subf %73, %70 : vector<2x32xf32>
    %75 = arith.select %72, %70, %74 : vector<2x32xi1>, vector<2x32xf32>
    %cst_38 = arith.constant 1.000000e+00 : f32
    %76 = vector.broadcast %cst_38 : f32 to vector<2x32xf32>
    %77 = arith.addf %76, %75 : vector<2x32xf32>
    %78 = arith.mulf %41, %77 : vector<2x32xf32>
    %79 = arith.truncf %78 : vector<2x32xf32> to vector<2x32xbf16>
    %c0_39 = arith.constant 0 : index
    %c0_40 = arith.constant 0 : index
    %c0_41 = arith.constant 0 : index
    %80 = vector.load %arg8[%c0_39, %c0_40, %c0_41] : memref<1x32x128xbf16, #tpu.memory_space<vmem>>, vector<1x32x128xbf16>
    %81 = vector.shape_cast %80 : vector<1x32x128xbf16> to vector<32x128xbf16>
    %cst_42 = arith.constant dense<0.000000e+00> : vector<2x128xf32>
    %82 = tpu.matmul %79, %81, %cst_42 {dimension_numbers = #tpu.dot_dimension_numbers<[1], [0], [0], [1], [0, 0, 1, 1], [], []>} : vector<2x32xbf16>, vector<32x128xbf16>, vector<2x128xf32> -> vector<2x128xf32>
    %83 = arith.truncf %6 : vector<2x32xf32> to vector<2x32xbf16>
    %c0_43 = arith.constant 0 : index
    %c0_44 = arith.constant 0 : index
    %c0_45 = arith.constant 0 : index
    %84 = vector.load %arg9[%c0_43, %c0_44, %c0_45] : memref<1x32x128xbf16, #tpu.memory_space<vmem>>, vector<1x32x128xbf16>
    %85 = vector.shape_cast %84 : vector<1x32x128xbf16> to vector<32x128xbf16>
    %cst_46 = arith.constant dense<0.000000e+00> : vector<2x128xf32>
    %86 = tpu.matmul %83, %85, %cst_46 {dimension_numbers = #tpu.dot_dimension_numbers<[1], [0], [0], [1], [0, 0, 1, 1], [], []>} : vector<2x32xbf16>, vector<32x128xbf16>, vector<2x128xf32> -> vector<2x128xf32>
    %87 = arith.addf %82, %86 : vector<2x128xf32>
    %c0_47 = arith.constant 0 : index
    %c0_48 = arith.constant 0 : index
    %c0_49 = arith.constant 0 : index
    %88 = vector.load %arg10[%c0_47, %c0_48, %c0_49] : memref<1x1x128xf32, #tpu.memory_space<vmem>>, vector<1x1x128xf32>
    %89 = vector.shape_cast %88 : vector<1x1x128xf32> to vector<1x128xf32>
    %90 = vector.broadcast %89 : vector<1x128xf32> to vector<2x128xf32>
    %91 = arith.addf %87, %90 : vector<2x128xf32>
    %92 = arith.negf %91 : vector<2x128xf32>
    %93 = math.exp %92 : vector<2x128xf32>
    %cst_50 = arith.constant 1.000000e+00 : f32
    %94 = vector.broadcast %cst_50 : f32 to vector<2x128xf32>
    %95 = arith.addf %94, %93 : vector<2x128xf32>
    %96 = arith.divf %94, %95 : vector<2x128xf32>
    %97 = tpu.iota {dimensions = array<i32: 1>} : vector<2x128xi32>
    %c64_i32 = arith.constant 64 : i32
    %98 = vector.broadcast %c64_i32 : i32 to vector<2x128xi32>
    %99 = arith.cmpi sge, %97, %98 : vector<2x128xi32>
    %c96_i32 = arith.constant 96 : i32
    %100 = vector.broadcast %c96_i32 : i32 to vector<2x128xi32>
    %101 = arith.cmpi slt, %97, %100 : vector<2x128xi32>
    %102 = arith.andi %99, %101 : vector<2x128xi1>
    %cst_51 = arith.constant 2.000000e+00 : f32
    %103 = vector.broadcast %cst_51 : f32 to vector<2x128xf32>
    %104 = arith.mulf %103, %96 : vector<2x128xf32>
    %cst_52 = arith.constant 1.000000e+00 : f32
    %105 = vector.broadcast %cst_52 : f32 to vector<2x128xf32>
    %106 = arith.subf %104, %105 : vector<2x128xf32>
    %107 = arith.select %102, %106, %96 : vector<2x128xi1>, vector<2x128xf32>
    %108 = vector.extract_strided_slice %107 {offsets = [0, 0], sizes = [2, 32], strides = [1, 1]} : vector<2x128xf32> to vector<2x32xf32>
    %109 = vector.extract_strided_slice %107 {offsets = [0, 32], sizes = [2, 32], strides = [1, 1]} : vector<2x128xf32> to vector<2x32xf32>
    %110 = vector.extract_strided_slice %107 {offsets = [0, 64], sizes = [2, 32], strides = [1, 1]} : vector<2x128xf32> to vector<2x32xf32>
    %111 = vector.extract_strided_slice %107 {offsets = [0, 96], sizes = [2, 32], strides = [1, 1]} : vector<2x128xf32> to vector<2x32xf32>
    %112 = arith.mulf %109, %8 : vector<2x32xf32>
    %113 = arith.mulf %108, %110 : vector<2x32xf32>
    %114 = arith.addf %112, %113 : vector<2x32xf32>
    %115 = math.tanh %114 : vector<2x32xf32>
    %116 = arith.mulf %111, %115 : vector<2x32xf32>
    %117 = arith.index_cast %arg0 : i32 to index
    %118 = memref.load %arg11[%117] : memref<3xf32, #tpu.memory_space<smem>>
    %119 = vector.broadcast %118 : f32 to vector<2x32xf32>
    %120 = arith.mulf %119, %8 : vector<2x32xf32>
    %cst_53 = arith.constant 1.000000e+00 : f32
    %121 = arith.subf %cst_53, %118 : f32
    %122 = vector.broadcast %121 : f32 to vector<2x32xf32>
    %123 = arith.mulf %122, %114 : vector<2x32xf32>
    %124 = arith.addf %120, %123 : vector<2x32xf32>
    %c0_54 = arith.constant 0 : index
    %c0_55 = arith.constant 0 : index
    %c0_56 = arith.constant 0 : index
    %125 = vector.load %arg20[%c0_54, %c0_55, %c0_56] : memref<1x2x32xf32, #tpu.memory_space<vmem>>, vector<1x2x32xf32>
    %126 = vector.shape_cast %125 : vector<1x2x32xf32> to vector<2x32xf32>
    %127 = vector.shape_cast %124 : vector<2x32xf32> to vector<1x2x32xf32>
    tpu.vector_store %arg20[%c0_54, %c0_55, %c0_56], %127 {strides = array<i32>} : memref<1x2x32xf32, #tpu.memory_space<vmem>>, vector<1x2x32xf32>,
    %c0_57 = arith.constant 0 : index
    %c0_58 = arith.constant 0 : index
    %c0_59 = arith.constant 0 : index
    %128 = vector.load %arg19[%c0_57, %c0_58, %c0_59] : memref<1x2x32xf32, #tpu.memory_space<vmem>>, vector<1x2x32xf32>
    %129 = vector.shape_cast %128 : vector<1x2x32xf32> to vector<2x32xf32>
    %130 = vector.shape_cast %116 : vector<2x32xf32> to vector<1x2x32xf32>
    tpu.vector_store %arg19[%c0_57, %c0_58, %c0_59], %130 {strides = array<i32>} : memref<1x2x32xf32, #tpu.memory_space<vmem>>, vector<1x2x32xf32>,
    %131 = arith.truncf %116 : vector<2x32xf32> to vector<2x32xbf16>
    %c0_60 = arith.constant 0 : index
    %c0_61 = arith.constant 0 : index
    %132 = vector.load %arg21[%c0_60, %c0_61] : memref<2x32xf32, #tpu.memory_space<vmem>>, vector<2x32xf32>
    %c0_62 = arith.constant 0 : index
    %c0_63 = arith.constant 0 : index
    %c0_64 = arith.constant 0 : index
    %133 = vector.load %arg12[%c0_62, %c0_63, %c0_64] : memref<1x32x32xbf16, #tpu.memory_space<vmem>>, vector<1x32x32xbf16>
    %134 = vector.shape_cast %133 : vector<1x32x32xbf16> to vector<32x32xbf16>
    %cst_65 = arith.constant dense<0.000000e+00> : vector<2x32xf32>
    %135 = tpu.matmul %131, %134, %cst_65 {dimension_numbers = #tpu.dot_dimension_numbers<[1], [0], [0], [1], [0, 0, 1, 1], [], []>} : vector<2x32xbf16>, vector<32x32xbf16>, vector<2x32xf32> -> vector<2x32xf32>
    %136 = arith.addf %132, %135 : vector<2x32xf32>
    %c0_66 = arith.constant 0 : index
    %c0_67 = arith.constant 0 : index
    %137 = vector.load %arg21[%c0_66, %c0_67] : memref<2x32xf32, #tpu.memory_space<vmem>>, vector<2x32xf32>
    tpu.vector_store %arg21[%c0_66, %c0_67], %136 {strides = array<i32>} : memref<2x32xf32, #tpu.memory_space<vmem>>, vector<2x32xf32>,
    %c0_68 = arith.constant 0 : index
    %c0_69 = arith.constant 0 : index
    %138 = vector.load %arg22[%c0_68, %c0_69] : memref<2x32xf32, #tpu.memory_space<vmem>>, vector<2x32xf32>
    %c0_70 = arith.constant 0 : index
    %c0_71 = arith.constant 0 : index
    %c0_72 = arith.constant 0 : index
    %139 = vector.load %arg16[%c0_70, %c0_71, %c0_72] : memref<1x32x32xbf16, #tpu.memory_space<vmem>>, vector<1x32x32xbf16>
    %140 = vector.shape_cast %139 : vector<1x32x32xbf16> to vector<32x32xbf16>
    %cst_73 = arith.constant dense<0.000000e+00> : vector<2x32xf32>
    %141 = tpu.matmul %131, %140, %cst_73 {dimension_numbers = #tpu.dot_dimension_numbers<[1], [0], [0], [1], [0, 0, 1, 1], [], []>} : vector<2x32xbf16>, vector<32x32xbf16>, vector<2x32xf32> -> vector<2x32xf32>
    %142 = arith.addf %138, %141 : vector<2x32xf32>
    %c0_74 = arith.constant 0 : index
    %c0_75 = arith.constant 0 : index
    %143 = vector.load %arg22[%c0_74, %c0_75] : memref<2x32xf32, #tpu.memory_space<vmem>>, vector<2x32xf32>
    tpu.vector_store %arg22[%c0_74, %c0_75], %142 {strides = array<i32>} : memref<2x32xf32, #tpu.memory_space<vmem>>, vector<2x32xf32>,
    %c2_i32 = arith.constant 2 : i32
    %144 = arith.cmpi eq, %arg0, %c2_i32 : i32
    %145 = arith.extui %144 : i1 to i32
    %c0_i32_76 = arith.constant 0 : i32
    %146 = arith.cmpi ne, %145, %c0_i32_76 : i32
    scf.if %146 {
      %c0_77 = arith.constant 0 : index
      %c0_78 = arith.constant 0 : index
      %147 = vector.load %arg21[%c0_77, %c0_78] : memref<2x32xf32, #tpu.memory_space<vmem>>, vector<2x32xf32>
      %c0_79 = arith.constant 0 : index
      %c0_80 = arith.constant 0 : index
      %148 = vector.load %arg13[%c0_79, %c0_80] : memref<1x32xf32, #tpu.memory_space<vmem>>, vector<1x32xf32>
      %149 = vector.broadcast %148 : vector<1x32xf32> to vector<2x32xf32>
      %150 = arith.addf %147, %149 : vector<2x32xf32>
      %151 = arith.truncf %150 : vector<2x32xf32> to vector<2x32xbf16>
      %c0_81 = arith.constant 0 : index
      %c0_82 = arith.constant 0 : index
      %152 = vector.load %arg14[%c0_81, %c0_82] : memref<32x32xbf16, #tpu.memory_space<vmem>>, vector<32x32xbf16>
      %cst_83 = arith.constant dense<0.000000e+00> : vector<2x32xf32>
      %153 = tpu.matmul %151, %152, %cst_83 {dimension_numbers = #tpu.dot_dimension_numbers<[1], [0], [0], [1], [0, 0, 1, 1], [], []>} : vector<2x32xbf16>, vector<32x32xbf16>, vector<2x32xf32> -> vector<2x32xf32>
      %c0_84 = arith.constant 0 : index
      %c0_85 = arith.constant 0 : index
      %154 = vector.load %arg15[%c0_84, %c0_85] : memref<1x32xf32, #tpu.memory_space<vmem>>, vector<1x32xf32>
      %155 = vector.broadcast %154 : vector<1x32xf32> to vector<2x32xf32>
      %156 = arith.addf %153, %155 : vector<2x32xf32>
      %c0_86 = arith.constant 0 : index
      %c0_87 = arith.constant 0 : index
      %157 = vector.load %arg22[%c0_86, %c0_87] : memref<2x32xf32, #tpu.memory_space<vmem>>, vector<2x32xf32>
      %c0_88 = arith.constant 0 : index
      %c0_89 = arith.constant 0 : index
      %158 = vector.load %arg17[%c0_88, %c0_89] : memref<1x32xf32, #tpu.memory_space<vmem>>, vector<1x32xf32>
      %159 = vector.broadcast %158 : vector<1x32xf32> to vector<2x32xf32>
      %160 = arith.addf %157, %159 : vector<2x32xf32>
      %161 = arith.addf %160, %156 : vector<2x32xf32>
      %c0_90 = arith.constant 0 : index
      %c0_91 = arith.constant 0 : index
      %162 = vector.load %arg18[%c0_90, %c0_91] : memref<2x32xf32, #tpu.memory_space<vmem>>, vector<2x32xf32>
      tpu.vector_store %arg18[%c0_90, %c0_91], %161 {strides = array<i32>} : memref<2x32xf32, #tpu.memory_space<vmem>>, vector<2x32xf32>,
    } else {
    }
    return
  }
  func.func @transform_0(%arg0: i32) -> (i32, i32) {
    %c0_i32 = arith.constant 0 : i32
    %c0_i32_0 = arith.constant 0 : i32
    %c0_i32_1 = arith.constant 0 : i32
    return %c0_i32, %c0_i32_0 : i32, i32
  }
  func.func @transform_1(%arg0: i32) -> (i32, i32, i32) {
    %c0_i32 = arith.constant 0 : i32
    %c0_i32_0 = arith.constant 0 : i32
    %c0_i32_1 = arith.constant 0 : i32
    return %arg0, %c0_i32, %c0_i32_0 : i32, i32, i32
  }
  func.func @transform_2(%arg0: i32) -> (i32, i32, i32) {
    %c0_i32 = arith.constant 0 : i32
    %c0_i32_0 = arith.constant 0 : i32
    %c0_i32_1 = arith.constant 0 : i32
    return %arg0, %c0_i32, %c0_i32_0 : i32, i32, i32
  }
  func.func @transform_3(%arg0: i32) -> (i32, i32, i32) {
    %c0_i32 = arith.constant 0 : i32
    %c0_i32_0 = arith.constant 0 : i32
    %c0_i32_1 = arith.constant 0 : i32
    return %arg0, %c0_i32, %c0_i32_0 : i32, i32, i32
  }
  func.func @transform_4(%arg0: i32) -> (i32, i32, i32) {
    %c0_i32 = arith.constant 0 : i32
    %c0_i32_0 = arith.constant 0 : i32
    %c0_i32_1 = arith.constant 0 : i32
    return %arg0, %c0_i32, %c0_i32_0 : i32, i32, i32
  }
  func.func @transform_5(%arg0: i32) -> (i32, i32, i32) {
    %c0_i32 = arith.constant 0 : i32
    %c0_i32_0 = arith.constant 0 : i32
    %c0_i32_1 = arith.constant 0 : i32
    return %arg0, %c0_i32, %c0_i32_0 : i32, i32, i32
  }
  func.func @transform_6(%arg0: i32) -> (i32, i32, i32) {
    %c0_i32 = arith.constant 0 : i32
    %c0_i32_0 = arith.constant 0 : i32
    %c0_i32_1 = arith.constant 0 : i32
    return %arg0, %c0_i32, %c0_i32_0 : i32, i32, i32
  }
  func.func @transform_7(%arg0: i32) -> (i32, i32, i32) {
    %c0_i32 = arith.constant 0 : i32
    %c0_i32_0 = arith.constant 0 : i32
    %c0_i32_1 = arith.constant 0 : i32
    return %arg0, %c0_i32, %c0_i32_0 : i32, i32, i32
  }
  func.func @transform_8(%arg0: i32) -> (i32, i32, i32) {
    %c0_i32 = arith.constant 0 : i32
    %c0_i32_0 = arith.constant 0 : i32
    %c0_i32_1 = arith.constant 0 : i32
    return %arg0, %c0_i32, %c0_i32_0 : i32, i32, i32
  }
  func.func @transform_9(%arg0: i32) -> (i32, i32, i32) {
    %c0_i32 = arith.constant 0 : i32
    %c0_i32_0 = arith.constant 0 : i32
    %c0_i32_1 = arith.constant 0 : i32
    return %arg0, %c0_i32, %c0_i32_0 : i32, i32, i32
  }
  func.func @transform_10(%arg0: i32) -> i32 {
    %c0_i32 = arith.constant 0 : i32
    %c0_i32_0 = arith.constant 0 : i32
    return %c0_i32 : i32
  }
  func.func @transform_11(%arg0: i32) -> (i32, i32, i32) {
    %c0_i32 = arith.constant 0 : i32
    %c0_i32_0 = arith.constant 0 : i32
    %c0_i32_1 = arith.constant 0 : i32
    return %arg0, %c0_i32, %c0_i32_0 : i32, i32, i32
  }
  func.func @transform_12(%arg0: i32) -> (i32, i32) {
    %c0_i32 = arith.constant 0 : i32
    %c0_i32_0 = arith.constant 0 : i32
    %c0_i32_1 = arith.constant 0 : i32
    return %c0_i32, %c0_i32_0 : i32, i32
  }
  func.func @transform_13(%arg0: i32) -> (i32, i32) {
    %c0_i32 = arith.constant 0 : i32
    %c0_i32_0 = arith.constant 0 : i32
    %c0_i32_1 = arith.constant 0 : i32
    return %c0_i32, %c0_i32_0 : i32, i32
  }
  func.func @transform_14(%arg0: i32) -> (i32, i32) {
    %c0_i32 = arith.constant 0 : i32
    %c0_i32_0 = arith.constant 0 : i32
    %c0_i32_1 = arith.constant 0 : i32
    return %c0_i32, %c0_i32_0 : i32, i32
  }
  func.func @transform_15(%arg0: i32) -> (i32, i32, i32) {
    %c0_i32 = arith.constant 0 : i32
    %c0_i32_0 = arith.constant 0 : i32
    %c0_i32_1 = arith.constant 0 : i32
    return %arg0, %c0_i32, %c0_i32_0 : i32, i32, i32
  }
  func.func @transform_16(%arg0: i32) -> (i32, i32) {
    %c0_i32 = arith.constant 0 : i32
    %c0_i32_0 = arith.constant 0 : i32
    %c0_i32_1 = arith.constant 0 : i32
    return %c0_i32, %c0_i32_0 : i32, i32
  }
  func.func @transform_17(%arg0: i32) -> (i32, i32) {
    %c0_i32 = arith.constant 0 : i32
    %c0_i32_0 = arith.constant 0 : i32
    %c0_i32_1 = arith.constant 0 : i32
    return %c0_i32, %c0_i32_0 : i32, i32
  }
  func.func @transform_18(%arg0: i32) -> (i32, i32, i32) {
    %c0_i32 = arith.constant 0 : i32
    %c0_i32_0 = arith.constant 0 : i32
    %c0_i32_1 = arith.constant 0 : i32
    return %arg0, %c0_i32, %c0_i32_0 : i32, i32, i32
  }
  func.func @transform_19(%arg0: i32) -> (i32, i32, i32) {
    %c0_i32 = arith.constant 0 : i32
    %c0_i32_0 = arith.constant 0 : i32
    %c0_i32_1 = arith.constant 0 : i32
    return %arg0, %c0_i32, %c0_i32_0 : i32, i32, i32
  }
}

</mosaic_0001>

<bundles_post_ra>
// kernel: enhanced_xlstm_forward.1
= control target key start
LH: loop header
LB: loop body
LE: loop exit
PB: predicated region body
PF: predicated region fallthrough
CT: control target
= control target key end

     0   :  { %s2961_s0 = inlined_call_operand.vmem [shape: f32[2,32], index: 0, kind: input, shape index: {}]   ;;  %s2962_s1 = inlined_call_operand.vmem [shape: f32[3,2,32], index: 1, kind: input, shape index: {}, may-alias: {1,18}]   ;;  %s2963_s2 = inlined_call_operand.vmem [shape: f32[3,2,32], index: 2, kind: input, shape index: {}, may-alias: {2,19}]   ;;  %s2964_s3 = inlined_call_operand.hbm [shape: bf16[3,32,32], index: 3, kind: input, shape index: {}]   ;;  %s2965_s4 = inlined_call_operand.hbm [shape: f32[3,1,32], index: 4, kind: input, shape index: {}]   ;;  %s2966_s5 = inlined_call_operand.vmem [shape: f32[3,1,32], index: 5, kind: input, shape index: {}]   ;;  %s2967_s6 = inlined_call_operand.hbm [shape: f32[3,1,32], index: 6, kind: input, shape index: {}]   ;;  %s2968_s7 = inlined_call_operand.hbm [shape: bf16[3,32,128], index: 7, kind: input, shape index: {}]   ;;  %s2969_s8 = inlined_call_operand.hbm [shape: bf16[3,32,128], index: 8, kind: input, shape index: {}]   ;;  %s2970_s9 = inlined_call_operand.hbm [shape: f32[3,1,128], index: 9, kind: input, shape index: {}]   ;;  %s2971_s10 = inlined_call_operand.vmem [shape: f32[3], index: 10, kind: input, shape index: {}]   ;;  %s2972_s11 = inlined_call_operand.hbm [shape: bf16[3,32,32], index: 11, kind: input, shape index: {}]   ;;  %s2973_s12 = inlined_call_operand.hbm [shape: f32[1,32], index: 12, kind: input, shape index: {}]   ;;  %s2974_s13 = inlined_call_operand.vmem [shape: bf16[32,32], index: 13, kind: input, shape index: {}]   ;;  %s2975_s14 = inlined_call_operand.hbm [shape: f32[1,32], index: 14, kind: input, shape index: {}]   ;;  %s2976_s15 = inlined_call_operand.hbm [shape: bf16[3,32,32], index: 15, kind: input, shape index: {}]   ;;  %s2977_s16 = inlined_call_operand.hbm [shape: f32[1,32], index: 16, kind: input, shape index: {}]   ;;  %s2978_s17 = inlined_call_operand.hbm [shape: f32[2,32], index: 17, kind: output, shape index: {0}]   ;;  %s2979_s18 = inlined_call_operand.vmem [shape: f32[3,2,32], index: 18, kind: output, shape index: {1}, may-alias: {1,18}]   ;;  %s2980_s19 = inlined_call_operand.vmem [shape: f32[3,2,32], index: 19, kind: output, shape index: {2}, may-alias: {2,19}]  }
   0x1   :  { %2996 = sst [smem:[#allocation42_spill]] %s2961_s0 }
   0x2   :  { %2997 = sst [smem:[#allocation43_spill]] %s2962_s1 }
   0x3   :  { %2998 = sst [smem:[#allocation44_spill]] %s2963_s2 }
   0x4   :  { %2999 = sst [smem:[#allocation45_spill]] %s2964_s3 }
   0x5   :  { %3000 = sst [smem:[#allocation46_spill]] %s2965_s4 }
   0x6   :  { %3001 = sst [smem:[#allocation47_spill]] %s2966_s5 }
   0x7   :  { %3002 = sst [smem:[#allocation48_spill]] %s2968_s7 }
   0x8   :  { %3003 = sst [smem:[#allocation49_spill]] %s2973_s12 }
   0x9   :  { %3004 = sst [smem:[#allocation50_spill]] %s2974_s13 }
   0xa   :  { %3005 = sst [smem:[#allocation51_spill]] %s2977_s16 }
   0xb   :  { %3006 = sst [smem:[#allocation52_spill]] %s2978_s17 }
   0xc   :  { %3007 = sst [smem:[#allocation53_spill]] %s2979_s18 }
   0xd   :  { %3008 = sst [smem:[#allocation54_spill]] %s2980_s19 }
   0xe   :  { %25 = vsyncpa [#allocation5], 0 }
   0xf   :  { %27 = vsyncpa [#allocation5 + $0x1], 0 }
  0x10   :  { %28 = vsyncpa [#allocation9], 0 }
  0x11   :  { %30 = vsyncpa [#allocation9 + $0x1], 0 }
  0x12   :  { %31 = vsyncpa [#allocation12], 0 }
  0x13   :  { %33 = vsyncpa [#allocation12 + $0x1], 0 }
  0x14   :  { %34 = vsyncpa [#allocation15], 0 }
  0x15   :  { %36 = vsyncpa [#allocation15 + $0x1], 0 }
  0x16   :  { %37 = vsyncpa [#allocation7], 0 }
  0x17   :  { %38 = vsyncpa [#allocation19], 0 }
  0x18   :  { %39 = vsyncpa [#allocation22], 0 }
  0x19   :  { %41 = vsyncpa [#allocation22 + $0x1], 0 }
  0x1a   :  { %42 = vsyncpa [#allocation6], 0  ;;  %s2535_s0 = smov 0   ;;  %s2537_s30 = smov 0  }
  0x1b   :  { %s2539_s20 = smov 0   ;;  %s2541_s21 = smov 0  }
  0x1c LB: > { %3009 = sst [smem:[#allocation35_spill]] %s2413_s30  ;;  %s2554_s1 = sadd.s32 4294967295, %s2421_s21   ;;  %s2421_s21 = sphi %s2541_s21, %s3061_s21   ;;  %s2417_s20 = sphi %s2539_s20, %s3064_s20   ;;  %s2413_s30 = sphi %s2537_s30, %s3063_s30   ;;  %s2409_s0 = sphi %s2535_s0, %s3062_s0  }
  0x1d   : > { %3010 = sst [smem:[#allocation36_spill]] %s2417_s20  ;;  %p141_p0 = scmp.ne.s32.totalorder %s2413_s30, %s2409_s0 }
  0x1e   : > { %3011 = sst [smem:[#allocation37_spill]] %s2554_s1  ;;  %p142_p1 = scmp.eq.s32.totalorder %s2554_s1, 0 }
  0x1f   : > { %p1714_p2 = scmp.ge.s32.totalorder %s2421_s21, 1  ;;  %p538_p3 = scmp.lt.s32.totalorder %s2421_s21, 4 }
  0x20   : > { %p1715_p4 = scmp.ne.s32.totalorder %s2554_s1, 0  ;;  %p2563_p5 = por %p142_p1, %p141_p0 }
  0x21   : > { %s3014_s12 = sld [smem:[#allocation49_spill]]  ;;  %p2570_p6 = pnand %p1714_p2, %p538_p3 }
  0x22   : > { %s3012_s22 = scalar_select %p2563_p5, 1, 0 }
  0x23   : > { %s3015_s25 = scalar_select %p2570_p6, 1, 0 }
  0x24   : > { %3013 = sst [smem:[#allocation38_spill]] %s3012_s22  ;;  %p1864_p7 = pneg %p2570_p6 }
  0x25   : > { %3016 = sst [smem:[#allocation39_spill]] %s3015_s25  ;;  %s2423_s3 = smov [#allocation18]  }
  0x26   : > { %s565_s26 = sshll.u32 %s2423_s3, 4  ;;  %s3017_s16 = sld [smem:[#allocation51_spill]]  ;;  %s566_s26 = int_to_ptr.vmem [resolvable:$true] %s565_s26 }
  0x27   : > { %s563_s24 = sshll.u32 %s3014_s12, 4  ;;  %p2581_p8 = pnand %p1864_p7, %p142_p1  ;;  %s564_s24 = int_to_ptr.hbm [resolvable:$true] %s563_s24 }
  0x28   : > { %s2424_s2 = smov [#allocation23]   ;;  %s2590_s3 = sadd.s32 1, %s2421_s21  }
  0x29   : > { %s592_s23 = sshll.u32 %s2424_s2, 4  ;;  %3019 = sst [smem:[#allocation40_spill]] %s2590_s3  ;;  %s593_s23 = int_to_ptr.vmem [resolvable:$true] %s592_s23 }
  0x2a   : > { %1870 = dma.hbm_to_vmem [thread:$0]  (!%p2581_p8), %s564_s24, 16, %s566_s26, [#allocation19]  }
  0x2b   : > { %s128_s27 = sadd.s32 1, %s2417_s20  ;;  %s125_s28 = ssub.s32 %s2421_s21, %s2590_s3 }
  0x2c   : > { %s590_s29 = sshll.u32 %s3017_s16, 4  ;;  %p135_p9 = scmp.ne.s32.totalorder %s2417_s20, %s2413_s30  ;;  %s591_s29 = int_to_ptr.hbm [resolvable:$true] %s590_s29 }
  0x2d   : > { %1876 = dma.hbm_to_vmem [thread:$0]  (!%p2581_p8), %s591_s29, 16, %s593_s23, [#allocation22]  }
  0x2e   : > { %p126_p10 = scmp.eq.s32.totalorder %s125_s28, 0  ;;  %p136_p11 = scmp.eq.s32.totalorder %s2421_s21, 0 }
  0x2f   : > { %p1906_p12 = scmp.lt.s32.totalorder %s2421_s21, 3  ;;  %s2600_s12 = sand.u32 1, %s2417_s20  }
  0x30   : > { %s2603_s16 = scalar_select %p126_p10, %s2417_s20, %s128_s27  }
  0x31   : > { %p137_p13 = por %p136_p11, %p135_p9  ;;  %s2606_s2 = sand.u32 1, %s2421_s21  }
  0x32   : > { %3020 = sst [smem:[#allocation41_spill]] %s2603_s16  ;;  %s642_s3 = scalar_lea.vmem [#allocation8], %s2600_s12 }
  0x33   : > { %p2608_p0 = pnand %p1906_p12, %p137_p13  ;;  %s3022_s4 = sld [smem:[#allocation46_spill]] }
  0x34   : > { %s649_s17 = sshll.u32 %s642_s3, 4  ;;  %s2989_s27 = scalar_lea.sflag [#allocation9], %s2606_s2  ;;  %s650_s17 = int_to_ptr.vmem [resolvable:$true] %s649_s17 }
  0x35   : > { %p2620_p3 = pneg %p2608_p0 }
  0x39   : > { %s645_s23 = scalar_lea.hbm %s3022_s4, %s2421_s21  ;;  %s2045_s3 = scalar_lea.hbm %s3022_s4, 3 }
  0x3a   : > { %s647_s28 = sshll.u32 %s645_s23, 4  ;;  %s648_s28 = int_to_ptr.hbm [resolvable:$true] %s647_s28 }
  0x3b   : > { %s2038_s16 = sshra.s32 %s648_s28, 4  ;;  %s2039_s16 = int_to_ptr.hbm [resolvable:$true] %s2038_s16 }
  0x3c   : > { %s2040_s20 = scalar_lea.hbm %s2039_s16, 1  ;;  %p2046_p10 = scmp.lt.s32.totalorder %s2039_s16, %s3022_s4 }
  0x3d   : > { %p2041_p2 = scmp.ne.s32.totalorder %s2039_s16, %s2040_s20  ;;  %p2047_p11 = scmp.lt.s32.totalorder %s2045_s3, %s2040_s20 }
  0x3f   : > { %p2043_p7 = pnand %p2620_p3, %p2041_p2  ;;  %p2048_p12 = por %p2047_p11, %p2046_p10 }
  0x41   : > { %p2044_p9 = pneg %p2043_p7 }
  0x43   : > { %p2049_p13 = pnand %p2048_p12, %p2044_p9 }
  0x45   : > { %2052 = shalt.err (!%p2049_p13)
}
  0x46   : > { %1883 = dma.hbm_to_vmem [thread:$0]  (!%p2608_p0), %s648_s28, 16, %s650_s17, %s2989_s27  }
  0x47   : > { %s2637_s18 = sshll.u32 %s2600_s12, 4  ;;  %s2640_s26 = sshll.u32 %s2421_s21, 4 }
  0x48   : > { %s3024_s7 = sld [smem:[#allocation48_spill]]  ;;  %s683_s29 = scalar_lea.vmem [#allocation11], %s2637_s18 }
  0x49   : > { %s691_s3 = sshll.u32 %s683_s29, 4  ;;  %s2995_s4 = scalar_lea.sflag [#allocation12], %s2606_s2  ;;  %s692_s3 = int_to_ptr.vmem [resolvable:$true] %s691_s3 }
  0x4e   : > { %s688_s20 = scalar_lea.hbm %s3024_s7, %s2640_s26  ;;  %s2075_s27 = scalar_lea.hbm %s3024_s7, 48 }
  0x4f   : > { %s689_s23 = sshll.u32 %s688_s20, 4  ;;  %s690_s23 = int_to_ptr.hbm [resolvable:$true] %s689_s23 }
  0x50   : > { %s2068_s5 = sshra.s32 %s690_s23, 4  ;;  %s2069_s5 = int_to_ptr.hbm [resolvable:$true] %s2068_s5 }
  0x51   : > { %s2070_s1 = scalar_lea.hbm %s2069_s5, 16  ;;  %p2076_p10 = scmp.lt.s32.totalorder %s2069_s5, %s3024_s7 }
  0x52   : > { %p2071_p2 = scmp.ne.s32.totalorder %s2069_s5, %s2070_s1  ;;  %p2077_p11 = scmp.lt.s32.totalorder %s2075_s27, %s2070_s1 }
  0x54   : > { %p2073_p7 = pnand %p2071_p2, %p2620_p3  ;;  %p2078_p12 = por %p2077_p11, %p2076_p10 }
  0x56   : > { %p2074_p9 = pneg %p2073_p7 }
  0x58   : > { %p2079_p13 = pnand %p2078_p12, %p2074_p9 }
  0x5a   : > { %2082 = shalt.err (!%p2079_p13)
}
  0x5b   : > { %s2425_s19 = smov 64   ;;  %s2426_s20 = smov 4  }
  0x5c   : > { %1889 = dma.hbm_to_vmem [thread:$0]  (!%p2608_p0), %s690_s23, 256, %s692_s3, %s2995_s4, %s2425_s19, %s2425_s19, %s2426_s20  }
  0x5d   : > { %s729_s1 = scalar_lea.hbm %s2970_s9, %s2421_s21  ;;  %s726_s29 = scalar_lea.vmem [#allocation14], %s2600_s12 }
  0x5e   : > { %s731_s27 = sshll.u32 %s729_s1, 4  ;;  %s733_s17 = sshll.u32 %s726_s29, 4  ;;  %s732_s27 = int_to_ptr.hbm [resolvable:$true] %s731_s27  ;;  %s734_s17 = int_to_ptr.vmem [resolvable:$true] %s733_s17 }
  0x5f   : > { %s2994_s28 = scalar_lea.sflag [#allocation15], %s2606_s2  ;;  %s2098_s16 = sshra.s32 %s732_s27, 4  ;;  %s2099_s16 = int_to_ptr.hbm [resolvable:$true] %s2098_s16 }
  0x60   : > { %s2100_s7 = scalar_lea.hbm %s2099_s16, 1  ;;  %s2105_s3 = scalar_lea.hbm %s2970_s9, 3 }
  0x61   : > { %p2101_p2 = scmp.ne.s32.totalorder %s2099_s16, %s2100_s7  ;;  %p2106_p10 = scmp.lt.s32.totalorder %s2099_s16, %s2970_s9 }
  0x62   : > { %p2107_p11 = scmp.lt.s32.totalorder %s2105_s3, %s2100_s7 }
  0x63   : > { %p2103_p7 = pnand %p2101_p2, %p2620_p3 }
  0x64   : > { %p2108_p12 = por %p2107_p11, %p2106_p10 }
  0x65   : > { %p2104_p9 = pneg %p2103_p7 }
  0x67   : > { %p2109_p13 = pnand %p2108_p12, %p2104_p9 }
  0x69   : > { %2112 = shalt.err (!%p2109_p13)
}
  0x6a   : > { %1895 = dma.hbm_to_vmem [thread:$0]  (!%p2608_p0), %s732_s27, 16, %s734_s17, %s2994_s28  }
  0x6b   : > { %s553_s25 = sshll.u32 %s2971_s10, 4  ;;  %s578_s29 = sshll.u32 %s2975_s14, 4  ;;  %s554_s25 = int_to_ptr.vmem [resolvable:$true] %s553_s25  ;;  %s579_s29 = int_to_ptr.hbm [resolvable:$true] %s578_s29 }
  0x6c   : > { %s2427_s16 = smov [#allocation16]   ;;  %s2428_s3 = smov [#allocation20]  }
  0x6d   : > { %1867 = dma.vmem_to_smem (!%p2581_p8), %s554_s25, 16, %s2427_s16, [#allocation7]  }
  0x6e   : > { %s580_s23 = sshll.u32 %s2428_s3, 4  ;;  %s3025_s22 = sld [smem:[#allocation45_spill]]  ;;  %s581_s23 = int_to_ptr.vmem [resolvable:$true] %s580_s23 }
  0x6f   : > { %1873 = dma.hbm_to_vmem [thread:$0]  (!%p2581_p8), %s579_s29, 16, %s581_s23, [#allocation19]  }
  0x70   : > { %s621_s30 = scalar_lea.vmem [#allocation4], %s2637_s18  ;;  %s618_s1 = scalar_lea.sflag [#allocation5], %s2600_s12 }
  0x71   : > { %s629_s28 = sshll.u32 %s621_s30, 4  ;;  %s630_s28 = int_to_ptr.vmem [resolvable:$true] %s629_s28 }
  0x74   : > { %s626_s5 = scalar_lea.hbm %s3025_s22, %s2640_s26  ;;  %s2180_s29 = scalar_lea.hbm %s3025_s22, 48 }
  0x75   : > { %s627_s4 = sshll.u32 %s626_s5, 4  ;;  %s628_s4 = int_to_ptr.hbm [resolvable:$true] %s627_s4 }
  0x76   : > { %s2173_s7 = sshra.s32 %s628_s4, 4  ;;  %s2174_s7 = int_to_ptr.hbm [resolvable:$true] %s2173_s7 }
  0x77   : > { %s2175_s25 = scalar_lea.hbm %s2174_s7, 16  ;;  %p2181_p8 = scmp.lt.s32.totalorder %s2174_s7, %s3025_s22 }
  0x78   : > { %p2176_p2 = scmp.ne.s32.totalorder %s2174_s7, %s2175_s25  ;;  %p2182_p10 = scmp.lt.s32.totalorder %s2180_s29, %s2175_s25 }
  0x7a   : > { %p2178_p7 = pnand %p2176_p2, %p2620_p3  ;;  %p2183_p11 = por %p2182_p10, %p2181_p8 }
  0x7c   : > { %p2179_p9 = pneg %p2178_p7 }
  0x7e   : > { %p2184_p12 = pnand %p2183_p11, %p2179_p9 }
  0x80   : > { %2187 = shalt.err (!%p2184_p12)
}
  0x81   : > { %1880 = dma.hbm_to_vmem [thread:$0]  (!%p2608_p0), %s628_s4, 256, %s630_s28, %s618_s1, %s2425_s19, %s2425_s19, %s2426_s20  }
  0x82   : > { %s668_s5 = scalar_lea.hbm %s2967_s6, %s2421_s21  ;;  %s665_s30 = scalar_lea.vmem [#allocation10], %s2600_s12 }
  0x83   : > { %s672_s16 = sshll.u32 %s665_s30, 4  ;;  %s670_s7 = sshll.u32 %s668_s5, 4  ;;  %s673_s16 = int_to_ptr.vmem [resolvable:$true] %s672_s16  ;;  %s671_s7 = int_to_ptr.hbm [resolvable:$true] %s670_s7 }
  0x84   : > { %s2203_s25 = sshra.s32 %s671_s7, 4  ;;  %s2210_s4 = scalar_lea.hbm %s2967_s6, 3  ;;  %s2204_s25 = int_to_ptr.hbm [resolvable:$true] %s2203_s25 }
  0x85   : > { %s2205_s0 = scalar_lea.hbm %s2204_s25, 1  ;;  %p2211_p9 = scmp.lt.s32.totalorder %s2204_s25, %s2967_s6 }
  0x86   : > { %p2206_p13 = scmp.ne.s32.totalorder %s2204_s25, %s2205_s0  ;;  %p2212_p8 = scmp.lt.s32.totalorder %s2210_s4, %s2205_s0 }
  0x88   : > { %p2208_p2 = pnand %p2206_p13, %p2620_p3  ;;  %p2213_p10 = por %p2212_p8, %p2211_p9 }
  0x8a   : > { %p2209_p7 = pneg %p2208_p2 }
  0x8c   : > { %p2214_p11 = pnand %p2213_p10, %p2209_p7 }
  0x8e   : > { %2217 = shalt.err (!%p2214_p11)
}
  0x8f   : > { %s3026_s12 = scalar_lea.sflag [#allocation9], %s2606_s2  ;;  %s710_s27 = scalar_lea.hbm %s2969_s8, %s2640_s26 }
  0x90   : > { %1886 = dma.hbm_to_vmem [thread:$0]  (!%p2608_p0), %s671_s7, 16, %s673_s16, %s3026_s12  }
  0x91   : > { %s705_s17 = scalar_lea.vmem [#allocation13], %s2637_s18  ;;  %s711_s30 = sshll.u32 %s710_s27, 4  ;;  %s712_s30 = int_to_ptr.hbm [resolvable:$true] %s711_s30 }
  0x92   : > { %s713_s5 = sshll.u32 %s705_s17, 4  ;;  %s2233_s25 = sshra.s32 %s712_s30, 4  ;;  %s714_s5 = int_to_ptr.vmem [resolvable:$true] %s713_s5  ;;  %s2234_s25 = int_to_ptr.hbm [resolvable:$true] %s2233_s25 }
  0x93   : > { %s2235_s0 = scalar_lea.hbm %s2234_s25, 16  ;;  %s2240_s16 = scalar_lea.hbm %s2969_s8, 48 }
  0x94   : > { %p2236_p12 = scmp.ne.s32.totalorder %s2234_s25, %s2235_s0  ;;  %p2241_p7 = scmp.lt.s32.totalorder %s2234_s25, %s2969_s8 }
  0x95   : > { %p2242_p9 = scmp.lt.s32.totalorder %s2240_s16, %s2235_s0 }
  0x96   : > { %p2238_p13 = pnand %p2236_p12, %p2620_p3 }
  0x97   : > { %p2243_p8 = por %p2242_p9, %p2241_p7 }
  0x98   : > { %p2239_p2 = pneg %p2238_p13 }
  0x9a   : > { %p2244_p10 = pnand %p2243_p8, %p2239_p2 }
  0x9c   : > { %2247 = shalt.err (!%p2244_p10)
}
  0x9d   : > { %s3027_s28 = scalar_lea.sflag [#allocation12], %s2606_s2  ;;  %s749_s21 = scalar_lea.hbm %s2972_s11, %s2640_s26 }
  0x9e   : > { %1892 = dma.hbm_to_vmem [thread:$0]  (!%p2608_p0), %s712_s30, 256, %s714_s5, %s3027_s28, %s2425_s19, %s2425_s19, %s2426_s20  }
  0x9f   : > { %s744_s23 = scalar_lea.vmem [#allocation17], %s2637_s18  ;;  %s750_s17 = sshll.u32 %s749_s21, 4  ;;  %s751_s17 = int_to_ptr.hbm [resolvable:$true] %s750_s17 }
  0xa0   : > { %s752_s27 = sshll.u32 %s744_s23, 4  ;;  %s2263_s25 = sshra.s32 %s751_s17, 4  ;;  %s753_s27 = int_to_ptr.vmem [resolvable:$true] %s752_s27  ;;  %s2264_s25 = int_to_ptr.hbm [resolvable:$true] %s2263_s25 }
  0xa1   : > { %s2265_s0 = scalar_lea.hbm %s2264_s25, 16  ;;  %s2270_s5 = scalar_lea.hbm %s2972_s11, 48 }
  0xa2   : > { %p2266_p11 = scmp.ne.s32.totalorder %s2264_s25, %s2265_s0  ;;  %p2271_p2 = scmp.lt.s32.totalorder %s2264_s25, %s2972_s11 }
  0xa3   : > { %p2272_p7 = scmp.lt.s32.totalorder %s2270_s5, %s2265_s0 }
  0xa4   : > { %p2268_p12 = pnand %p2266_p11, %p2620_p3 }
  0xa5   : > { %p2273_p9 = por %p2272_p7, %p2271_p2 }
  0xa6   : > { %p2269_p13 = pneg %p2268_p12 }
  0xa8   : > { %p2274_p8 = pnand %p2273_p9, %p2269_p13 }
  0xaa   : > { %2277 = shalt.err (!%p2274_p8)
}
  0xab   : > { %s3028_s7 = scalar_lea.sflag [#allocation15], %s2606_s2  ;;  %s771_s1 = scalar_lea.hbm %s2976_s15, %s2640_s26 }
  0xac   : > { %1898 = dma.hbm_to_vmem [thread:$0]  (!%p2608_p0), %s751_s17, 256, %s753_s27, %s3028_s7, %s2425_s19, %s2425_s19, %s2426_s20  }
  0xad   : > { %s766_s12 = scalar_lea.vmem [#allocation21], %s2637_s18  ;;  %s772_s23 = sshll.u32 %s771_s1, 4  ;;  %s773_s23 = int_to_ptr.hbm [resolvable:$true] %s772_s23 }
  0xae   : > { %s774_s21 = sshll.u32 %s766_s12, 4  ;;  %s763_s25 = scalar_lea.sflag [#allocation22], %s2606_s2  ;;  %s775_s21 = int_to_ptr.vmem [resolvable:$true] %s774_s21 }
  0xaf   : > { %s2293_s0 = sshra.s32 %s773_s23, 4  ;;  %s2300_s27 = scalar_lea.hbm %s2976_s15, 48  ;;  %s2294_s0 = int_to_ptr.hbm [resolvable:$true] %s2293_s0 }
  0xb0   : > { %s2295_s29 = scalar_lea.hbm %s2294_s0, 16  ;;  %p2301_p13 = scmp.lt.s32.totalorder %s2294_s0, %s2976_s15 }
  0xb1   : > { %p2296_p10 = scmp.ne.s32.totalorder %s2294_s0, %s2295_s29  ;;  %p2302_p2 = scmp.lt.s32.totalorder %s2300_s27, %s2295_s29 }
  0xb3   : > { %p2298_p11 = pnand %p2296_p10, %p2620_p3  ;;  %p2303_p7 = por %p2302_p2, %p2301_p13 }
  0xb5   : > { %p2299_p12 = pneg %p2298_p11 }
  0xb7   : > { %p2304_p9 = pnand %p2303_p7, %p2299_p12 }
  0xb9   : > { %2307 = shalt.err (!%p2304_p9)
}
  0xba   : > { %1901 = dma.hbm_to_vmem [thread:$0]  (!%p2608_p0), %s773_s23, 256, %s775_s21, %s763_s25, %s2425_s19, %s2425_s19, %s2426_s20  }
  0xbb   : > { %786 = sbr.rel (%p2570_p6) target bundleno = 1576 (0x628), region = 88  ;;  %s3030_s18 = sld [smem:[#allocation35_spill]] (!%p2570_p6) }
  0xc1   : > { %s2789_s26 = sand.u32 1, %s3030_s18  }
  0xc2   : > { %s2792_s16 = sshll.u32 %s2789_s26, 4  ;;  %s789_s7 = scalar_lea.sflag [#allocation5], %s2789_s26 }
  0xc3   : > { %2368 = dma.done.wait (%p2563_p5), %s789_s7, 256  }
  0xc4   : > { %2370 = vsyncadd (%p2563_p5), %s789_s7, 4294967040  ;;  %s3032_s24 = sld [smem:[#allocation37_spill]] }
  0xca   : > { %s798_s19 = sand.u32 1, %s3032_s24  }
  0xcb   : > { %s799_s20 = scalar_lea.sflag [#allocation9], %s798_s19 }
  0xcc   : > { %2372 = dma.done.wait (%p2563_p5), %s799_s20, 32  }
  0xcd   : > { %2374 = vsyncadd (%p2563_p5), %s799_s20, 4294967264  ;;  %s817_s12 = scalar_lea.sflag [#allocation12], %s798_s19 }
  0xce   : > { %2376 = dma.done.wait (%p2563_p5), %s817_s12, 512  }
  0xcf   : > { %2378 = vsyncadd (%p2563_p5), %s817_s12, 4294966784  ;;  %s837_s25 = scalar_lea.sflag [#allocation15], %s798_s19 }
  0xd0   : > { %2380 = dma.done.wait (%p2563_p5), %s837_s25, 16  }
  0xd1   : > { %2382 = vsyncadd (%p2563_p5), %s837_s25, 4294967280 }
  0xd2   : > { %2384 = dma.done.wait (%p142_p1), [#allocation7], 16  }
  0xd3   : > { %2386 = vsyncadd (%p142_p1), [#allocation7], 4294967280 }
  0xd4   : > { %2388 = dma.done.wait (%p2563_p5), %s837_s25, 256  }
  0xd5   : > { %2390 = vsyncadd (%p2563_p5), %s837_s25, 4294967040 }
  0xd6   : > { %2392 = dma.done.wait (%p142_p1), [#allocation19], 32  }
  0xd7   : > { %2394 = vsyncadd (%p142_p1), [#allocation19], 4294967264  ;;  %s871_s3 = scalar_lea.sflag [#allocation22], %s798_s19 }
  0xd8   : > { %2396 = dma.done.wait (%p2563_p5), %s871_s3, 256  }
  0xd9   : > { %2398 = vsyncadd (%p2563_p5), %s871_s3, 4294967040 }
  0xda   : > { %2400 = dma.done.wait (%p142_p1), [#allocation22], 16  }
  0xdb   : > { %2402 = vsyncadd (%p142_p1), [#allocation22], 4294967280 }
  0xdc   : > { %885 = sfence }
  0xdd   : > { %p982_p6 = scmp.lt.s32.totalorder %s3032_s24, 2  ;;  %s3033_s18 = sld [smem:[#allocation47_spill]] }
  0xde   : > { %s3034_s20 = sld [smem:[#allocation43_spill]] }
  0xdf   : > { %s2842_s27 = scalar_select %p982_p6, %s3032_s24, 2 }
  0xe0   : > { %s3035_s29 = sld [smem:[#allocation44_spill]] }
  0xe1   : > { %s2845_s17 = sshll.u32 %s2842_s27, 1  ;;  %s3036_s21 = sld [smem:[#allocation53_spill]] }
  0xe2   : > { %s3037_s30 = sld [smem:[#allocation54_spill]] }
  0xe3   : > { %s992_s2 = scalar_lea.vmem %s3033_s18, %s2842_s27 }
  0xe4   : > { %s985_s12 = scalar_lea.vmem %s3034_s20, %s2845_s17  ;;  %1005 = sbr.rel (%p1715_p4) target bundleno = 236 (0xec), region = 140 }
  0xe6   : > { %s989_s5 = scalar_lea.vmem %s3035_s29, %s2845_s17 }
  0xe7   : > { %s996_s23 = scalar_lea.vmem %s3036_s21, %s2845_s17 }
  0xe8   : > { %s1000_s13 = scalar_lea.vmem %s3037_s30, %s2845_s17 }
  0xe9   : > { %vm1006_vm0 = vcmask 254976   ;;  %v2429_v0 = vmov 0.0  }
  0xea   : > { %1007 = vst.msk [vmem:[#allocation2] sm:$0x3] %vm1006_vm0, %v2429_v0 }
  0xeb   : > { %1008 = vst.msk [vmem:[#allocation3] sm:$0x3] %vm1006_vm0, %v2429_v0 }
  0xec PF: > { %s3038_s18 = scalar_lea.vmem [#allocation4], %s2792_s16  ;;  %s3040_s4 = sld [smem:[#allocation42_spill]]  ;;  %vm1033_vm1 = vcmask 261120   ;;  %vm1050_vm2 = vcmask 254976   ;;  %v2430_v10 = vmov 32.0  }
  0xed   : > { %v1817_v1 = vld [vmem:[%s3038_s18 + $0x8] sm:$0xff]  ;;  %s3039_s29 = smov %s3038_s18  ;;  %s3041_s24 = scalar_lea.vmem [#allocation8], %s2789_s26  ;;  %1961 = vrcp.f32 %v2430_v10 }
  0xee   : > { %v1816_v2 = vld [vmem:[%s3039_s29] sm:$0xff]  ;;  %1043 = vmatpush.bf16.msra.mxu0 %v1817_v1  ;;  %s3042_s28 = scalar_lea.vmem [#allocation13], %s2792_s16  ;;  %s3043_s0 = scalar_lea.vmem [#allocation11], %s2792_s16 }
  0xef   : > { %v1957_v5 = vld [vmem:[%s3041_s24] ss:$0 sm:$0xff]  ;;  %s3044_s7 = smov %s3042_s28  ;;  %s3045_s19 = smov %s3043_s0 }
  0xf0   : > { %v1821_v22 = vld [vmem:[%s3042_s28 + $0x8] sm:$0xff]  ;;  %s3048_s29 = scalar_lea.vmem [#allocation10], %s2789_s26  ;;  %s3049_s27 = scalar_lea.vmem [#allocation14], %s2789_s26 }
  0xf1   : > { %v1819_v23 = vld [vmem:[%s3043_s0 + $0x8] sm:$0xff]  ;;  %1147 = vmatpush.bf16.msra.mxu1 %v1821_v22  ;;  %s3050_s26 = sld [smem:[#allocation37_spill]]  ;;  %s2432_s24 = smov 32  }
  0xf2   : > { %v1009_v3 = vld [vmem:[%s3040_s4] sm:$0x3]  ;;  %1044 = vmatpush.bf16.msra.mxu0 %v1816_v2  ;;  %1175 = vmatpush.bf16.msra.mxu2 %v1819_v23  ;;  %s3053_s25 = scalar_lea.vmem [#allocation21], %s2792_s16  ;;  %s3054_s3 = scalar_lea.vmem [#allocation17], %s2792_s16 }
  0xf3   : > { %v1010_v4 = vpack.c.bf16 %v1009_v3, %v1009_v3  ;;  %v1962_v11 = vpop.eup %1961  ;;  %v1820_v24 = vld [vmem:[%s3044_s7] sm:$0xff]  ;;  %s2433_s7 = smov 96   ;;  %s3056_s30 = smov %s3053_s25 }
  0xf4   : > { %v1055_v12 = vmul.f32 32.0, %v1962_v11  ;;  %vm1059_vm3 = vweird.f32 %v1962_v11  ;;  %v1818_v25 = vld [vmem:[%s3045_s19] sm:$0xff] }
  0xf5   : > { %1758 = vmatmul.msk.bf16.vlgmr.msra.gmra.mxu0 %vm1033_vm1, %v1010_v4  ;;  %v1011_v26 = vld [vmem:[%s985_s12] sm:$0x3]  ;;  %1148 = vmatpush.bf16.msra.mxu1 %v1820_v24  ;;  %s3055_s12 = smov %s3054_s3 }
  0xf6   : > { %v1056_v13 = vsub.f32 1.0, %v1055_v12  ;;  %v1121_v27 = vpack.c.bf16 %v1011_v26, %v1011_v26  ;;  %1176 = vmatpush.bf16.msra.mxu2 %v1818_v25  ;;  %v1958_v37 = vld [vmem:[%s992_s2] ss:$0 sm:$0xff]  ;;  %s2431_s2 = smov 64  }
  0xf7   : > { %v1959_v40 = vld [vmem:[%s3048_s29] ss:$0 sm:$0xff]  ;;  %s1235_s28 = sld [smem:[#allocation16 + %s3050_s26]]  ;;  %p1797_p1 = scmp.ne.s32.totalorder %s3050_s26, 2 }
  0xf8   : > { %v1057_v14 = vmul.f32 %v1962_v11, %v1056_v13  ;;  %1767 = vmatmul.msk.bf16.vlgmr.msra.gmra.mxu1 %vm1033_vm1, %v1121_v27  ;;  %s3058_s17 = sld [smem:[#allocation50_spill]] (!%p1797_p1) }
  0xfa   : > { %v1058_v15 = vadd.f32 %v1962_v11, %v1057_v14 }
  0xfc   : > { %v1060_v16 = vsel %vm1059_vm3, %v1962_v11, %v1058_v15 }
  0xfd   : > { %s1238_s0 = ssub.f32 1.0, %s1235_s28 }
 0x172   : > { %v1046_v6 = vpop.f32.mrf.mxu0 }
 0x173   : > { %v1047_v7 = vadd.f32 %v1957_v5, %v1046_v6 }
 0x175   : > { %v1051_v8 = vsel %vm1050_vm2, %v1047_v7, 0.0  ;;  %v1150_v5 = vpop.f32.mrf.mxu1 }
 0x176   : > { %1052 = vadd.xlane.f32.xlu0 %v1051_v8 }
 0x17a   : > { %v1048_v9 = vpop.f32.mrf.mxu0 }
 0x17d   : > { %v1152_v6 = vpop.f32.mrf.mxu1 }
 0x1e9   : > { %v1053_v17 = vpop.xlane.xlu0 %1052 }
 0x1ea   : > { %v1061_v18 = vmul.f32 %v1060_v16, %v1053_v17  ;;  %v1206_v17 = vlaneseq }
 0x1ec   : > { %v1062_v19 = vsub.f32 %v1047_v7, %v1061_v18  ;;  %v1960_v7 = vld [vmem:[%s3049_s27] ss:$0 sm:$0xff]  ;;  %v1207_v22 = vand.u32 127, %v1206_v17 }
 0x1ee   : > { %v1063_v20 = vmul.f32 %v1062_v19, %v1062_v19  ;;  %vm1208_vm12 = vcmp.ge.s32.totalorder %v1207_v22, 64  ;;  %vm1209_vm13 = vcmp.lt.s32.totalorder %v1207_v22, 96 }
 0x1ef   : > { %vm1210_vm14 = vmand %vm1208_vm12, %vm1209_vm13 }
 0x1f0   : > { %v1064_v21 = vsel %vm1050_vm2, %v1063_v20, 0.0 }
 0x1f1   : > { %1065 = vadd.xlane.f32.xlu0 %v1064_v21 }
 0x264   : > { %v1066_v28 = vpop.xlane.xlu0 %1065 }
 0x265   : > { %v1067_v29 = vmul.f32 %v1066_v28, %v1060_v16 }
 0x267   : > { %v1068_v30 = vadd.f32 1e-05, %v1067_v29 }
 0x269   : > { %1963 = vrsqrt.f32 %v1068_v30  ;;  %vm1075_vm5 = vweird.f32 %v1068_v30 }
 0x26f   : > { %v1964_v31 = vpop.eup %1963 }
 0x270   : > { %v1070_v32 = vmul.f32 %v1964_v31, %v1068_v30  ;;  %vm1076_vm4 = vweird.f32 %v1964_v31  ;;  %v1012_v30 = vld [vmem:[%s989_s5] sm:$0x3] }
 0x271   : > { %vm1077_vm6 = vmor %vm1075_vm5, %vm1076_vm4 }
 0x272   : > { %v1071_v33 = vmul.f32 %v1964_v31, %v1070_v32 }
 0x274   : > { %v1072_v34 = vmul.f32 0.5, %v1071_v33 }
 0x276   : > { %v1073_v35 = vsub.f32 1.5, %v1072_v34 }
 0x278   : > { %v1074_v36 = vmul.f32 %v1964_v31, %v1073_v35  ;;  %v1239_v35 = vstv %s1238_s0 }
 0x27a   : > { %v1078_v38 = vsel %vm1077_vm6, %v1964_v31, %v1074_v36 }
 0x27b   : > { %v1079_v39 = vmul.f32 %v1078_v38, %v1062_v19 }
 0x27d   : > { %v1084_v41 = vmul.f32 %v1958_v37, %v1079_v39 }
 0x27f   : > { %v1089_v42 = vadd.f32 %v1959_v40, %v1084_v41 }
 0x281   : > { %v1091_v43 = vmul.f32 0.70710677, %v1089_v42  ;;  %v1090_v1 = vmul.f32 0.5, %v1089_v42 }
 0x283   : > { %v1092_v44 = vand.u32 2147483647, %v1091_v43  ;;  %vm1111_vm7 = vcmp.ge.f32.partialorder %v1091_v43, 0.0  ;;  %v1236_v43 = vstv %s1235_s28 }
 0x285   : > { %v1093_v45 = vmul.f32 0.3275911, %v1092_v44  ;;  %v1105_v48 = vsub.f32 0.0, %v1092_v44 }
 0x287   : > { %v1094_v46 = vadd.f32 1.0, %v1093_v45  ;;  %v1106_v51 = vmul.f32 %v1105_v48, %v1092_v44  ;;  %v1237_v44 = vmul.f32 %v1236_v43, %v1012_v30  ;;  %v1823_v48 = vld [vmem:[%s3054_s3 + $0x8] sm:$0xff] }
 0x288   : > { %1282 = vmatpush.bf16.msra.mxu3 %v1823_v48 }
 0x289   : > { %1965 = vrcp.f32 %v1094_v46  ;;  %v1107_v54 = vmul.f32 1.442695, %v1106_v51 }
 0x28b   : > { %1967 = vpow2.f32 %v1107_v54 }
 0x28f   : > { %v1966_v47 = vpop.eup %1965 }
 0x290   : > { %v1096_v49 = vmul.f32 1.0614054, %v1966_v47 }
 0x291   : > { %v1968_v60 = vpop.eup %1967 }
 0x292   : > { %v1097_v50 = vadd.f32 -1.4531521, %v1096_v49  ;;  %v1822_v49 = vld [vmem:[%s3055_s12] sm:$0xff] }
 0x293   : > { %1283 = vmatpush.bf16.msra.mxu3 %v1822_v49 }
 0x294   : > { %v1098_v52 = vmul.f32 %v1966_v47, %v1097_v50  ;;  %v1824_v50 = vld [vmem:[%s3056_s30] sm:$0xff] }
 0x296   : > { %v1099_v53 = vadd.f32 1.4214138, %v1098_v52 }
 0x298   : > { %v1100_v55 = vmul.f32 %v1966_v47, %v1099_v53  ;;  %v1291_v53 = vld [vmem:[#allocation3] sm:$0x3] }
 0x29a   : > { %v1101_v56 = vadd.f32 -0.28449672, %v1100_v55 }
 0x29c   : > { %v1102_v57 = vmul.f32 %v1966_v47, %v1101_v56  ;;  %v1253_v56 = vld [vmem:[#allocation2] sm:$0x3] }
 0x29e   : > { %v1103_v58 = vadd.f32 0.2548296, %v1102_v57 }
 0x2a0   : > { %v1104_v59 = vmul.f32 %v1966_v47, %v1103_v58  ;;  %v1825_v47 = vld [vmem:[%s3053_s25 + $0x8] sm:$0xff] }
 0x2a1   : > { %1314 = vmatpush.bf16.msrb.mxu0 %v1825_v47 }
 0x2a2   : > { %v1109_v61 = vmul.f32 %v1968_v60, %v1104_v59 }
 0x2a4   : > { %v1110_v62 = vsub.f32 1.0, %v1109_v61 }
 0x2a5   : > { %1315 = vmatpush.bf16.msrb.mxu0 %v1824_v50 }
 0x2a6   : > { %v1112_v63 = vsub.f32 0.0, %v1110_v62 }
 0x2a8   : > { %v1113_v0 = vsel %vm1111_vm7, %v1110_v62, %v1112_v63 }
 0x2a9   : > { %v1114_v2 = vadd.f32 1.0, %v1113_v0 }
 0x2ab   : > { %v1115_v3 = vmul.f32 %v1114_v2, %v1090_v1 }
 0x2ad   : > { %v1116_v4 = vpack.c.bf16 %v1115_v3, %v1115_v3 }
 0x2af   : > { %1776 = vmatmul.msk.bf16.vlgmr.msra.gmra.mxu2 %vm1033_vm1, %v1116_v4 }
 0x332   : > { %v1178_v8 = vpop.f32.mrf.mxu2 }
 0x333   : > { %v1179_v9 = vadd.f32 %v1178_v8, %v1150_v5 }
 0x335   : > { %v1186_v10 = vadd.f32 %v1960_v7, %v1179_v9 }
 0x337   : > { %v1777_v11 = vmul.f32 -1.442695, %v1186_v10 }
 0x339   : > { %1969 = vpow2.f32 %v1777_v11 }
 0x33a   : > { %v1180_v12 = vpop.f32.mrf.mxu2 }
 0x33f   : > { %v1970_v13 = vpop.eup %1969 }
 0x340   : > { %v1190_v14 = vadd.f32 1.0, %v1970_v13 }
 0x342   : > { %1971 = vrcp.f32 %v1190_v14  ;;  %v1202_v19 = vand.u32 2147483648, %v1190_v14  ;;  %v1200_v21 = vand.u32 2147483647, %v1190_v14  ;;  %vm1196_vm9 = vweird.f32 %v1190_v14 }
 0x344   : > { %v1203_v24 = vor.u32 1.1754944e-38, %v1202_v19  ;;  %vm1201_vm11 = vcmp.eq.f32.partialorder %v1200_v21, 8.507059e+37 }
 0x348   : > { %v1972_v15 = vpop.eup %1971 }
 0x349   : > { %v1192_v16 = vmul.f32 %v1972_v15, %v1190_v14  ;;  %vm1197_vm8 = vweird.f32 %v1972_v15 }
 0x34a   : > { %vm1198_vm10 = vmor %vm1196_vm9, %vm1197_vm8 }
 0x34b   : > { %v1193_v18 = vsub.f32 1.0, %v1192_v16 }
 0x34d   : > { %v1194_v20 = vmul.f32 %v1972_v15, %v1193_v18 }
 0x34f   : > { %v1195_v23 = vadd.f32 %v1972_v15, %v1194_v20 }
 0x351   : > { %v1199_v25 = vsel %vm1198_vm10, %v1972_v15, %v1195_v23 }
 0x352   : > { %v1204_v26 = vsel %vm1201_vm11, %v1203_v24, %v1199_v25 }
 0x353   : > { %v1211_v27 = vmul.f32 2.0, %v1204_v26 }
 0x355   : > { %v1778_v28 = vadd.f32 -1.0, %v1211_v27 }
 0x357   : > { %v1213_v29 = vsel %vm1210_vm14, %v1778_v28, %v1204_v26 }
 0x358   : > { %1220 = vrot.lane.b32.xlu1 %v1213_v29, %s2431_s2 }
 0x360   : > { %1215 = vrot.lane.b32.xlu1 %v1012_v30, %s2432_s24 }
 0x3ca   : > { %v1221_v31 = vpop.permute.xlu1 %1220 }
 0x3cb   : > { %v1223_v32 = vmul.f32 %v1221_v31, %v1213_v29 }
 0x3cd   : > { %1225 = vrot.lane.b32.xlu2 %v1223_v32, %s2432_s24 }
 0x3d2   : > { %v1216_v33 = vpop.permute.xlu1 %1215 }
 0x3d3   : > { %v1218_v34 = vmul.f32 %v1216_v33, %v1213_v29 }
 0x427   : > { %v1226_v36 = vpop.permute.xlu2 %1225 }
 0x428   : > { %v1228_v37 = vadd.f32 %v1226_v36, %v1218_v34 }
 0x42a   : > { %1973 = vtanh.f32 %v1228_v37  ;;  %v1240_v38 = vmul.f32 %v1239_v35, %v1228_v37 }
 0x42c   : > { %1242 = vrot.lane.b32.xlu1 %v1240_v38, %s2433_s7 }
 0x430   : > { %v1974_v39 = vpop.eup %1973 }
 0x431   : > { %1231 = vrot.lane.b32.xlu2 %v1974_v39, %s2431_s2 }
 0x48b   : > { %v1232_v40 = vpop.permute.xlu2 %1231 }
 0x48c   : > { %v1234_v41 = vmul.f32 %v1232_v40, %v1213_v29 }
 0x48e   : > { %v1252_v42 = vpack.c.bf16 %v1234_v41, %v1234_v41  ;;  %1248 = vrot.lane.b32.xlu2 %v1234_v41, %s2432_s24 }
 0x490   : > { %1259 = vrot.lane.b32.xlu0 %v1252_v42, %s2432_s24 }
 0x49e   : > { %v1243_v45 = vpop.permute.xlu1 %1242 }
 0x49f   : > { %v1245_v46 = vadd.f32 %v1243_v45, %v1237_v44 }
 0x4a1   : > { %1246 = vst.msk [vmem:[%s1000_s13] sm:$0x3] %vm1050_vm2, %v1245_v46 }
 0x4e8   : > { %v1249_v51 = vpop.permute.xlu2 %1248 }
 0x4e9   : > { %1251 = vst.msk [vmem:[%s996_s23] sm:$0x3] %vm1050_vm2, %v1249_v51 }
 0x502   : > { %v1260_v52 = vpop.permute.xlu0 %1259 }
 0x503   : > { %1787 = vmatmul.msk.bf16.vlgmr.msra.gmra.mxu3 %vm1033_vm1, %v1260_v52  ;;  %1796 = vmatmul.msk.bf16.vlgmr.msrb.gmra.mxu0 %vm1033_vm1, %v1260_v52 }
 0x580   : > { %v1317_v54 = vpop.f32.mrf.mxu0 }
 0x581   : > { %v1321_v55 = vadd.f32 %v1317_v54, %v1291_v53 }
 0x583   : > { %1322 = vst.msk [vmem:[#allocation3] sm:$0x3] %vm1050_vm2, %v1321_v55 }
 0x586   : > { %v1285_v57 = vpop.f32.mrf.mxu3 }
 0x587   : > { %v1289_v58 = vadd.f32 %v1285_v57, %v1253_v56 }
 0x588   : > { %v1319_v59 = vpop.f32.mrf.mxu0 }
 0x589   : > { %1290 = vst.msk [vmem:[#allocation2] sm:$0x3] %vm1050_vm2, %v1289_v58 }
 0x58a   : > { %1326 = sbr.rel (%p1797_p1) target bundleno = 1565 (0x61d), region = 144 }
 0x58e   : > { %v1287_v60 = vpop.f32.mrf.mxu3 }
 0x58f   : > { %v1827_v61 = vld [vmem:[%s3058_s17 + $0x8] sm:$0xff]  ;;  %v1826_v0 = vld [vmem:[%s3058_s17] sm:$0xff] }
 0x590   : > { %v1327_v62 = vld [vmem:[#allocation2] sm:$0x3]  ;;  %v1975_v63 = vld [vmem:[#allocation18] ss:$0 sm:$0xff]  ;;  %1363 = vmatpush.bf16.msra.mxu0 %v1827_v61  ;;  %v1977_v3 = vld [vmem:[#allocation23] ss:$0 sm:$0xff] }
 0x591   : > { %v1332_v1 = vadd.f32 %v1975_v63, %v1327_v62  ;;  %v1370_v4 = vld [vmem:[#allocation3] sm:$0x3]  ;;  %v1976_v5 = vld [vmem:[#allocation20] ss:$0 sm:$0xff] }
 0x592   : > { %v1375_v6 = vadd.f32 %v1977_v3, %v1370_v4 }
 0x593   : > { %v1333_v2 = vpack.c.bf16 %v1332_v1, %v1332_v1 }
 0x594   : > { %1364 = vmatpush.bf16.msra.mxu0 %v1826_v0 }
 0x597   : > { %1806 = vmatmul.msk.bf16.vlgmr.msra.gmra.mxu0 %vm1033_vm1, %v1333_v2 }
 0x614   : > { %v1366_v7 = vpop.f32.mrf.mxu0 }
 0x615   : > { %v1367_v8 = vadd.f32 %v1976_v5, %v1366_v7 }
 0x617   : > { %v1376_v9 = vadd.f32 %v1375_v6, %v1367_v8 }
 0x619   : > { %1377 = vst.msk [vmem:[#allocation24] sm:$0x3] %vm1050_vm2, %v1376_v9 }
 0x61c   : > { %v1368_v10 = vpop.f32.mrf.mxu0 }
 0x61d PF: > { %s3059_s26 = sld [smem:[#allocation37_spill]]  ;;  %s2434_s1 = smov [#allocation24]  }
 0x61e   : > { %s1392_s21 = sshll.u32 %s2434_s1, 4  ;;  %s3060_s28 = sld [smem:[#allocation52_spill]]  ;;  %s1393_s21 = int_to_ptr.vmem [resolvable:$true] %s1392_s21 }
 0x623   : > { %p1911_p4 = scmp.eq.s32.totalorder %s3059_s26, 2 }
 0x624   : > { %s1394_s0 = sshll.u32 %s3060_s28, 4  ;;  %s1395_s0 = int_to_ptr.hbm [resolvable:$true] %s1394_s0 }
 0x625   : > { %1861 = dma.vmem_to_hbm [thread:$0]  (%p1911_p4), %s1393_s21, 32, %s1395_s0, [#allocation6]  }
 0x626   : > { %2404 = dma.done.wait (%p1911_p4), [#allocation6], 32  }
 0x627   : > { %2406 = vsyncadd (%p1911_p4), [#allocation6], 4294967264 }
 0x628 PF: > { %s3061_s21 = sld [smem:[#allocation40_spill]] }
 0x629   : > { %s3062_s0 = sld [smem:[#allocation35_spill]] }
 0x62a   : > { %s3063_s30 = sld [smem:[#allocation36_spill]] }
 0x62b   : > { %s3064_s20 = sld [smem:[#allocation41_spill]] }
 0x62e   : > { %p45_p5 = scmp.ge.s32.totalorder %s3061_s21, 5  }
 0x630   :  { %47 = sbr.rel (!%p45_p5) target bundleno = 28 (0x1c), region = 268 }
 0x635   :  { %1428 = vsyncpa [#allocation5], 1 }
 0x636   :  { %1430 = vsyncpa [#allocation5 + $0x1], 1 }
 0x637   :  { %1431 = vsyncpa [#allocation9], 1 }
 0x638   :  { %1433 = vsyncpa [#allocation9 + $0x1], 1 }
 0x639   :  { %1434 = vsyncpa [#allocation12], 1 }
 0x63a   :  { %1436 = vsyncpa [#allocation12 + $0x1], 1 }
 0x63b   :  { %1437 = vsyncpa [#allocation15], 1 }
 0x63c   :  { %1439 = vsyncpa [#allocation15 + $0x1], 1 }
 0x63d   :  { %1440 = vsyncpa [#allocation19], 1 }
 0x63e   :  { %1441 = vsyncpa [#allocation22], 1 }
 0x63f   :  { %1443 = vsyncpa [#allocation22 + $0x1], 1 }
 0x640   :  { %1444 = vsyncpa [#allocation6], 1 }
 0x641   :  { %1446 = vsyncpa [#allocation6 + $0x1], 1 }
 0x642   :  { %1447 = vsyncpa [#allocation7], 1 }
 0x643   :  { %1449 = vsyncpa [#allocation7 + $0x1], 1 }

</bundles_post_ra>
